<compile_context>
chip_gen: v7x
topology: tpu7x:2x2x1
jax: 0.10.0
libtpu: 0.0.40
codegen_flags: <defaults>
</compile_context>

<pallas_src>
import functools
import math

import jax
import jax.numpy as jnp
from jax.experimental import pallas as pl
from jax.experimental.pallas import tpu as pltpu

ITERS = 3
SMOOTH = 1.0
_LANE = 128
_SUBLANE = 8


# ---------------------------------------------------------------------------
# pltpu.roll direction probe (runs once at import time, outside any trace).
# ---------------------------------------------------------------------------
def _detect_roll_mode():
    try:
        def probe(x_ref, a_ref, b_ref):
            a_ref[...] = pltpu.roll(x_ref[...], 1, 1)   # lane rotate
            b_ref[...] = pltpu.roll(x_ref[...], 1, 0)   # sublane rotate

        x = (jax.lax.broadcasted_iota(jnp.float32, (_SUBLANE, _LANE), 1)
             + 1000.0 * jax.lax.broadcasted_iota(jnp.float32, (_SUBLANE, _LANE), 0))
        a, b = pl.pallas_call(
            probe,
            out_shape=(jax.ShapeDtypeStruct((_SUBLANE, _LANE), jnp.float32),
                       jax.ShapeDtypeStruct((_SUBLANE, _LANE), jnp.float32)),
        )(x)
        a, b = jax.block_until_ready((a, b))
        ok = (bool(jnp.array_equal(a, jnp.roll(x, 1, 1)))
              and bool(jnp.array_equal(b, jnp.roll(x, 1, 0))))
        return "pltpu" if ok else "jnp"
    except Exception:
        return "jnp"


_ROLL_MODE = _detect_roll_mode()


def _roll(x, shift, axis):
    """jnp.roll semantics; lowered to an XLU rotate via pltpu.roll when safe."""
    if _ROLL_MODE == "pltpu":
        s = shift % x.shape[axis]
        return x if s == 0 else pltpu.roll(x, s, axis)
    return jnp.roll(x, shift, axis)


# ---------------------------------------------------------------------------
# Pallas kernel: channel-1 softmax, soft skeletons of the packed pred/true
# planes, and per-block partial reduction sums.
# ---------------------------------------------------------------------------
def _cl_dice_kernel(pred_ref, true_ref, out_ref, *, iters, img_w):
    # pred_ref : (C, H, LB) f32 logits, batch packed along the lane axis
    # true_ref : (H, LB)    f32 ground-truth channel 1, same packing
    # out_ref  : (8, 128)   f32 partial sums in rows 0..3 (lane-dense store)
    num_ch = pred_ref.shape[0]
    t1 = true_ref[...]
    H, LB = t1.shape

    # Channel softmax; only channel 1 is materialized (p1 = e1 / denom).
    chans = [pred_ref[c] for c in range(num_ch)]
    m = chans[0]
    for c in chans[1:]:
        m = jnp.maximum(m, c)
    exps = [jnp.exp(c - m) for c in chans]
    denom = exps[0]
    for ex in exps[1:]:
        denom = denom + ex
    p1 = exps[1] / denom                     # exact divide keeps 1e-5 tolerance

    # Hoisted shift-validity masks: built once per invocation, reused by every
    # pooling pass of both skeletons.  They emulate max_pool2d's implicit
    # +/-inf padding plus the per-image boundaries created by lane packing.
    row = jax.lax.broadcasted_iota(jnp.int32, (H, LB), 0)
    col = jax.lax.broadcasted_iota(jnp.int32, (H, LB), 1)
    wpos = (col & (img_w - 1)) if (img_w & (img_w - 1)) == 0 else (col % img_w)
    ok_h_m1 = row >= 1                 # reading x[h-1, :]
    ok_h_p1 = row <= H - 2             # reading x[h+1, :]
    ok_w_m1 = wpos >= 1                # reading x[:, w-1] inside the image
    ok_w_p1 = wpos <= img_w - 2        # reading x[:, w+1] inside the image

    pos_inf = jnp.float32(jnp.inf)
    neg_inf = jnp.float32(-jnp.inf)

    def minpool_h(x):
        a = jnp.where(ok_h_m1, _roll(x, 1, 0), pos_inf)
        b = jnp.where(ok_h_p1, _roll(x, -1, 0), pos_inf)
        return jnp.minimum(jnp.minimum(a, b), x)

    def minpool_w(x):
        a = jnp.where(ok_w_m1, _roll(x, 1, 1), pos_inf)
        b = jnp.where(ok_w_p1, _roll(x, -1, 1), pos_inf)
        return jnp.minimum(jnp.minimum(a, b), x)

    def maxpool_h(x):
        a = jnp.where(ok_h_m1, _roll(x, 1, 0), neg_inf)
        b = jnp.where(ok_h_p1, _roll(x, -1, 0), neg_inf)
        return jnp.maximum(jnp.maximum(a, b), x)

    def maxpool_w(x):
        a = jnp.where(ok_w_m1, _roll(x, 1, 1), neg_inf)
        b = jnp.where(ok_w_p1, _roll(x, -1, 1), neg_inf)
        return jnp.maximum(jnp.maximum(a, b), x)

    def erode(x):
        return jnp.minimum(minpool_h(x), minpool_w(x))

    def dilate(x):
        return maxpool_h(maxpool_w(x))

    def skel(x):
        # Erode-reuse refactor: one erode per morphology step (was two).
        img = x
        er = erode(img)
        sk = jnp.maximum(img - dilate(er), 0.0)
        for _ in range(iters):            # iters is small (3): keep unrolled
            img = er                      # == soft_erode(previous img), reused
            er = erode(img)
            delta = jnp.maximum(img - dilate(er), 0.0)
            sk = sk + jnp.maximum(delta - sk * delta, 0.0)
        return sk

    pred_sk = skel(p1)
    true_sk = skel(t1)

    s_pred_true = jnp.sum(pred_sk * t1, keepdims=True)   # (1, 1)
    s_pred = jnp.sum(pred_sk, keepdims=True)
    s_true_pred = jnp.sum(true_sk * p1, keepdims=True)
    s_true = jnp.sum(true_sk, keepdims=True)

    # Single lane-dense (8,128) store per grid step; rows 0..3 hold partials.
    ri = jax.lax.broadcasted_iota(jnp.int32, (_SUBLANE, _LANE), 0)
    out_ref[...] = jnp.where(
        ri == 0, s_pred_true,
        jnp.where(ri == 1, s_pred,
                  jnp.where(ri == 2, s_true_pred,
                            jnp.where(ri == 3, s_true, 0.0))))


# ---------------------------------------------------------------------------
# Per-generation block planning.
# ---------------------------------------------------------------------------
@functools.lru_cache(maxsize=None)
def _tpu_plan():
    """(target input bytes per block, vmem_limit_bytes, prefer >=2 grid blocks)."""
    kind = ""
    try:
        kind = jax.devices()[0].device_kind.lower()
    except Exception:
        pass
    if "v7" in kind:                       # 2 TensorCores / chip, 64 MiB VMEM per TC
        return 2 << 20, 40 * 1024 * 1024, True
    if "v6" in kind or "v5" in kind:       # 1 TensorCore, 128 MiB physical VMEM
        return 6 << 20, 64 * 1024 * 1024, False
    return 2 << 20, 40 * 1024 * 1024, False


def _pick_block(B, C, H, W, target_bytes, prefer_split):
    """Pad the batch and pick images-per-block so every block is 128-lane dense."""
    tb_min = _LANE // math.gcd(W, _LANE)        # smallest tb with tb*W % 128 == 0
    b_pad = ((B + tb_min - 1) // tb_min) * tb_min
    cands = [tb for tb in range(tb_min, b_pad + 1, tb_min) if b_pad % tb == 0]
    if prefer_split and b_pad >= 2 * tb_min:    # v7x: keep nb >= 2 for megacore
        cands = [tb for tb in cands if b_pad // tb >= 2]
    per_img = (C + 1) * H * W * 4               # pred block + truth block, f32
    fitting = [tb for tb in cands if tb * per_img <= target_bytes]
    tb = max(fitting) if fitting else min(cands)
    return b_pad, tb


def cl_dice_loss(y_pred, y_true, *, iters=ITERS, smooth=SMOOTH):
    y_pred = y_pred.astype(jnp.float32)
    y_true = y_true.astype(jnp.float32)
    B, C, H, W = y_pred.shape

    target_bytes, vmem_limit, prefer_split = _tpu_plan()
    b_pad, tb = _pick_block(B, C, H, W, target_bytes, prefer_split)
    nb = b_pad // tb
    lb = tb * W                                 # lane width of one grid block

    # Lane-dense padding: pad images have channel-0 logit 0 and -1e9 elsewhere
    # (=> p1 == 0 exactly after the in-kernel softmax) and zero truth, so they
    # contribute 0 to all four reduction sums.
    true1 = y_true[:, 1]
    if b_pad > B:
        pad_logits = jnp.full((b_pad - B, C, H, W), -1e9, jnp.float32)
        pad_logits = pad_logits.at[:, 0].set(0.0)
        y_pred = jnp.concatenate([y_pred, pad_logits], axis=0)
        true1 = jnp.concatenate(
            [true1, jnp.zeros((b_pad - B, H, W), jnp.float32)], axis=0)

    # Wrapper-side layout plumbing: batch -> lane axis; only truth channel 1
    # ever reaches the kernel.
    pred_packed = jnp.transpose(y_pred, (1, 2, 0, 3)).reshape(C, H, b_pad * W)
    true1_packed = jnp.transpose(true1, (1, 0, 2)).reshape(H, b_pad * W)

    out = pl.pallas_call(
        functools.partial(_cl_dice_kernel, iters=iters, img_w=W),
        out_shape=jax.ShapeDtypeStruct((_SUBLANE, _LANE * nb), jnp.float32),
        grid=(nb,),
        in_specs=[
            pl.BlockSpec((C, H, lb), lambda b: (0, 0, b)),
            pl.BlockSpec((H, lb), lambda b: (0, b)),
        ],
        out_specs=pl.BlockSpec((_SUBLANE, _LANE), lambda b: (0, b)),
        compiler_params=pltpu.CompilerParams(
            dimension_semantics=("parallel",),   # per-block partials => safe
            vmem_limit_bytes=vmem_limit,
        ),
    )(pred_packed, true1_packed)

    partials = out.reshape(_SUBLANE, nb, _LANE)[:, :, 0]   # (8, nb)
    totals = jnp.sum(partials, axis=1)                     # (8,)
    s_pred_true, s_pred, s_true_pred, s_true = (
        totals[0], totals[1], totals[2], totals[3])

    tprec = (s_pred_true + smooth) / (s_pred + smooth)
    tsens = (s_true_pred + smooth) / (s_true + smooth)
    return 1.0 - 2.0 * (tprec * tsens) / (tprec + tsens)


# ---------------------------------------------------------------------------
# Pure-JAX reference (same math, no Pallas) for correctness checking.
# ---------------------------------------------------------------------------
def _shift2d(x, offset, axis, fill):
    n = x.shape[axis]
    rolled = jnp.roll(x, -offset, axis=axis)
    idx = jax.lax.broadcasted_iota(jnp.int32, x.shape, axis)
    valid = (idx + offset >= 0) & (idx + offset < n)
    return jnp.where(valid, rolled, jnp.asarray(fill, x.dtype))


def _minpool3(x, axis):
    inf = jnp.inf
    return jnp.minimum(
        jnp.minimum(_shift2d(x, -1, axis, inf), _shift2d(x, 1, axis, inf)), x)


def _maxpool3(x, axis):
    ninf = -jnp.inf
    return jnp.maximum(
        jnp.maximum(_shift2d(x, -1, axis, ninf), _shift2d(x, 1, axis, ninf)), x)


def _soft_erode(x):
    return jnp.minimum(_minpool3(x, 0), _minpool3(x, 1))


def _soft_dilate(x):
    return _maxpool3(_maxpool3(x, 1), 0)


def _soft_open(x):
    return _soft_dilate(_soft_erode(x))


def _soft_skel(x, iters):
    img = x
    skel = jnp.maximum(img - _soft_open(img), 0.0)
    for _ in range(iters):
        img = _soft_erode(img)
        delta = jnp.maximum(img - _soft_open(img), 0.0)
        skel = skel + jnp.maximum(delta - skel * delta, 0.0)
    return skel


def _ref_cl_dice(y_pred, y_true, *, iters=ITERS, smooth=SMOOTH):
    y_pred = y_pred.astype(jnp.float32)
    y_true = y_true.astype(jnp.float32)
    prob = jax.nn.softmax(y_pred, axis=1)
    skel = lambda x: _soft_skel(x, iters)
    pred_sk = jax.vmap(skel)(prob[:, 1])
    true_sk = jax.vmap(skel)(y_true[:, 1])
    tprec = (jnp.sum(pred_sk * y_true[:, 1]) + smooth) / (jnp.sum(pred_sk) + smooth)
    tsens = (jnp.sum(true_sk * prob[:, 1]) + smooth) / (jnp.sum(true_sk) + smooth)
    return 1.0 - 2.0 * (tprec * tsens) / (tprec + tsens)


if __name__ == "__main__":
    key = jax.random.PRNGKey(0)
    k1, k2 = jax.random.split(key)
    B, C, H, W = 2, 4, 16, 16

    y_pred = jax.random.normal(k1, (B, C, H, W), dtype=jnp.float32)   # logits
    labels = jax.random.randint(k2, (B, H, W), 0, C)
    y_true = jax.nn.one_hot(labels, C, axis=1, dtype=jnp.float32)     # (B,C,H,W)

    loss = jax.jit(cl_dice_loss)(y_pred, y_true)
    loss = jax.block_until_ready(loss)

    ref = _ref_cl_dice(y_pred, y_true)
    assert jnp.allclose(loss, ref, rtol=1e-5, atol=1e-5), (float(loss), float(ref))

    print("KERNEL_OK")
</pallas_src>

<mosaic_0001>
module attributes {stable_mosaic.version = 11 : i64} {
  func.func @probe(%arg0: memref<8x128xf32, #tpu.memory_space<vmem>>, %arg1: memref<8x128xf32, #tpu.memory_space<vmem>>, %arg2: memref<8x128xf32, #tpu.memory_space<vmem>>) attributes {dimension_semantics = [], scalar_prefetch = 0 : i64, scratch_operands = 0 : i64, tpu.core_type = #tpu.core_type<tc>} {
    %c0 = arith.constant 0 : index
    %c0_0 = arith.constant 0 : index
    %0 = vector.load %arg0[%c0, %c0_0] : memref<8x128xf32, #tpu.memory_space<vmem>>, vector<8x128xf32>
    %c1_i32 = arith.constant 1 : i32
    %1 = tpu.dynamic_rotate %0 by %c1_i32 dim 1 : vector<8x128xf32>, i32 -> vector<8x128xf32>
    %c0_1 = arith.constant 0 : index
    %c0_2 = arith.constant 0 : index
    %2 = vector.load %arg1[%c0_1, %c0_2] : memref<8x128xf32, #tpu.memory_space<vmem>>, vector<8x128xf32>
    tpu.vector_store %arg1[%c0_1, %c0_2], %1 {strides = array<i32>} : memref<8x128xf32, #tpu.memory_space<vmem>>, vector<8x128xf32>,
    %c0_3 = arith.constant 0 : index
    %c0_4 = arith.constant 0 : index
    %3 = vector.load %arg0[%c0_3, %c0_4] : memref<8x128xf32, #tpu.memory_space<vmem>>, vector<8x128xf32>
    %c1_i32_5 = arith.constant 1 : i32
    %4 = tpu.dynamic_rotate %3 by %c1_i32_5 dim 0 : vector<8x128xf32>, i32 -> vector<8x128xf32>
    %c0_6 = arith.constant 0 : index
    %c0_7 = arith.constant 0 : index
    %5 = vector.load %arg2[%c0_6, %c0_7] : memref<8x128xf32, #tpu.memory_space<vmem>>, vector<8x128xf32>
    tpu.vector_store %arg2[%c0_6, %c0_7], %4 {strides = array<i32>} : memref<8x128xf32, #tpu.memory_space<vmem>>, vector<8x128xf32>,
    return
  }
}

module attributes {stable_mosaic.version = 11 : i64} {
  func.func @_cl_dice_kernel(%arg0: i32, %arg1: memref<4x16x128xf32, #tpu.memory_space<vmem>>, %arg2: memref<16x128xf32, #tpu.memory_space<vmem>>, %arg3: memref<8x128xf32, #tpu.memory_space<vmem>>) attributes {dimension_semantics = [#tpu.dimension_semantics<parallel>], iteration_bounds = array<i64: 1>, scalar_prefetch = 0 : i64, scratch_operands = 0 : i64, tpu.core_type = #tpu.core_type<tc>, window_params = [{transform_indices = @transform_0, window_bounds = array<i64: 4, 16, 128>}, {transform_indices = @transform_1, window_bounds = array<i64: 16, 128>}, {transform_indices = @transform_2, window_bounds = array<i64: 8, 128>}]} {
    %c0 = arith.constant 0 : index
    %c0_0 = arith.constant 0 : index
    %0 = vector.load %arg2[%c0, %c0_0] : memref<16x128xf32, #tpu.memory_space<vmem>>, vector<16x128xf32>
    %c0_1 = arith.constant 0 : index
    %c0_2 = arith.constant 0 : index
    %c0_3 = arith.constant 0 : index
    %1 = vector.load %arg1[%c0_1, %c0_2, %c0_3] : memref<4x16x128xf32, #tpu.memory_space<vmem>>, vector<1x16x128xf32>
    %2 = vector.shape_cast %1 : vector<1x16x128xf32> to vector<16x128xf32>
    %c1 = arith.constant 1 : index
    %c0_4 = arith.constant 0 : index
    %c0_5 = arith.constant 0 : index
    %3 = vector.load %arg1[%c1, %c0_4, %c0_5] : memref<4x16x128xf32, #tpu.memory_space<vmem>>, vector<1x16x128xf32>
    %4 = vector.shape_cast %3 : vector<1x16x128xf32> to vector<16x128xf32>
    %c2 = arith.constant 2 : index
    %c0_6 = arith.constant 0 : index
    %c0_7 = arith.constant 0 : index
    %5 = vector.load %arg1[%c2, %c0_6, %c0_7] : memref<4x16x128xf32, #tpu.memory_space<vmem>>, vector<1x16x128xf32>
    %6 = vector.shape_cast %5 : vector<1x16x128xf32> to vector<16x128xf32>
    %c3 = arith.constant 3 : index
    %c0_8 = arith.constant 0 : index
    %c0_9 = arith.constant 0 : index
    %7 = vector.load %arg1[%c3, %c0_8, %c0_9] : memref<4x16x128xf32, #tpu.memory_space<vmem>>, vector<1x16x128xf32>
    %8 = vector.shape_cast %7 : vector<1x16x128xf32> to vector<16x128xf32>
    %9 = arith.maximumf %2, %4 : vector<16x128xf32>
    %10 = arith.maximumf %9, %6 : vector<16x128xf32>
    %11 = arith.maximumf %10, %8 : vector<16x128xf32>
    %12 = arith.subf %2, %11 : vector<16x128xf32>
    %13 = math.exp %12 : vector<16x128xf32>
    %14 = arith.subf %4, %11 : vector<16x128xf32>
    %15 = math.exp %14 : vector<16x128xf32>
    %16 = arith.subf %6, %11 : vector<16x128xf32>
    %17 = math.exp %16 : vector<16x128xf32>
    %18 = arith.subf %8, %11 : vector<16x128xf32>
    %19 = math.exp %18 : vector<16x128xf32>
    %20 = arith.addf %13, %15 : vector<16x128xf32>
    %21 = arith.addf %20, %17 : vector<16x128xf32>
    %22 = arith.addf %21, %19 : vector<16x128xf32>
    %23 = arith.divf %15, %22 : vector<16x128xf32>
    %24 = tpu.iota {dimensions = array<i32: 0>} : vector<16x128xi32>
    %25 = tpu.iota {dimensions = array<i32: 1>} : vector<16x128xi32>
    %c15_i32 = arith.constant 15 : i32
    %26 = vector.broadcast %c15_i32 : i32 to vector<16x128xi32>
    %27 = arith.andi %25, %26 : vector<16x128xi32>
    %c1_i32 = arith.constant 1 : i32
    %28 = vector.broadcast %c1_i32 : i32 to vector<16x128xi32>
    %29 = arith.cmpi sge, %24, %28 : vector<16x128xi32>
    %c14_i32 = arith.constant 14 : i32
    %30 = vector.broadcast %c14_i32 : i32 to vector<16x128xi32>
    %31 = arith.cmpi sle, %24, %30 : vector<16x128xi32>
    %c1_i32_10 = arith.constant 1 : i32
    %32 = vector.broadcast %c1_i32_10 : i32 to vector<16x128xi32>
    %33 = arith.cmpi sge, %27, %32 : vector<16x128xi32>
    %c14_i32_11 = arith.constant 14 : i32
    %34 = vector.broadcast %c14_i32_11 : i32 to vector<16x128xi32>
    %35 = arith.cmpi sle, %27, %34 : vector<16x128xi32>
    %36 = vector.extract_strided_slice %23 {offsets = [15, 0], sizes = [1, 128], strides = [1, 1]} : vector<16x128xf32> to vector<1x128xf32>
    %37 = vector.extract_strided_slice %23 {offsets = [0, 0], sizes = [15, 128], strides = [1, 1]} : vector<16x128xf32> to vector<15x128xf32>
    %38 = tpu.concatenate %36, %37 in 0 : vector<1x128xf32>, vector<15x128xf32> -> vector<16x128xf32>
    %cst = arith.constant 0x7F800000 : f32
    %39 = vector.broadcast %cst : f32 to vector<16x128xf32>
    %40 = arith.select %29, %38, %39 : vector<16x128xi1>, vector<16x128xf32>
    %41 = vector.extract_strided_slice %23 {offsets = [1, 0], sizes = [15, 128], strides = [1, 1]} : vector<16x128xf32> to vector<15x128xf32>
    %42 = vector.extract_strided_slice %23 {offsets = [0, 0], sizes = [1, 128], strides = [1, 1]} : vector<16x128xf32> to vector<1x128xf32>
    %43 = tpu.concatenate %41, %42 in 0 : vector<15x128xf32>, vector<1x128xf32> -> vector<16x128xf32>
    %cst_12 = arith.constant 0x7F800000 : f32
    %44 = vector.broadcast %cst_12 : f32 to vector<16x128xf32>
    %45 = arith.select %31, %43, %44 : vector<16x128xi1>, vector<16x128xf32>
    %46 = arith.minimumf %40, %45 : vector<16x128xf32>
    %47 = arith.minimumf %46, %23 : vector<16x128xf32>
    %48 = vector.extract_strided_slice %23 {offsets = [0, 127], sizes = [16, 1], strides = [1, 1]} : vector<16x128xf32> to vector<16x1xf32>
    %49 = vector.extract_strided_slice %23 {offsets = [0, 0], sizes = [16, 127], strides = [1, 1]} : vector<16x128xf32> to vector<16x127xf32>
    %50 = tpu.concatenate %48, %49 in 1 : vector<16x1xf32>, vector<16x127xf32> -> vector<16x128xf32>
    %cst_13 = arith.constant 0x7F800000 : f32
    %51 = vector.broadcast %cst_13 : f32 to vector<16x128xf32>
    %52 = arith.select %33, %50, %51 : vector<16x128xi1>, vector<16x128xf32>
    %53 = vector.extract_strided_slice %23 {offsets = [0, 1], sizes = [16, 127], strides = [1, 1]} : vector<16x128xf32> to vector<16x127xf32>
    %54 = vector.extract_strided_slice %23 {offsets = [0, 0], sizes = [16, 1], strides = [1, 1]} : vector<16x128xf32> to vector<16x1xf32>
    %55 = tpu.concatenate %53, %54 in 1 : vector<16x127xf32>, vector<16x1xf32> -> vector<16x128xf32>
    %cst_14 = arith.constant 0x7F800000 : f32
    %56 = vector.broadcast %cst_14 : f32 to vector<16x128xf32>
    %57 = arith.select %35, %55, %56 : vector<16x128xi1>, vector<16x128xf32>
    %58 = arith.minimumf %52, %57 : vector<16x128xf32>
    %59 = arith.minimumf %58, %23 : vector<16x128xf32>
    %60 = arith.minimumf %47, %59 : vector<16x128xf32>
    %61 = vector.extract_strided_slice %60 {offsets = [0, 127], sizes = [16, 1], strides = [1, 1]} : vector<16x128xf32> to vector<16x1xf32>
    %62 = vector.extract_strided_slice %60 {offsets = [0, 0], sizes = [16, 127], strides = [1, 1]} : vector<16x128xf32> to vector<16x127xf32>
    %63 = tpu.concatenate %61, %62 in 1 : vector<16x1xf32>, vector<16x127xf32> -> vector<16x128xf32>
    %cst_15 = arith.constant 0xFF800000 : f32
    %64 = vector.broadcast %cst_15 : f32 to vector<16x128xf32>
    %65 = arith.select %33, %63, %64 : vector<16x128xi1>, vector<16x128xf32>
    %66 = vector.extract_strided_slice %60 {offsets = [0, 1], sizes = [16, 127], strides = [1, 1]} : vector<16x128xf32> to vector<16x127xf32>
    %67 = vector.extract_strided_slice %60 {offsets = [0, 0], sizes = [16, 1], strides = [1, 1]} : vector<16x128xf32> to vector<16x1xf32>
    %68 = tpu.concatenate %66, %67 in 1 : vector<16x127xf32>, vector<16x1xf32> -> vector<16x128xf32>
    %cst_16 = arith.constant 0xFF800000 : f32
    %69 = vector.broadcast %cst_16 : f32 to vector<16x128xf32>
    %70 = arith.select %35, %68, %69 : vector<16x128xi1>, vector<16x128xf32>
    %71 = arith.maximumf %65, %70 : vector<16x128xf32>
    %72 = arith.maximumf %71, %60 : vector<16x128xf32>
    %73 = vector.extract_strided_slice %72 {offsets = [15, 0], sizes = [1, 128], strides = [1, 1]} : vector<16x128xf32> to vector<1x128xf32>
    %74 = vector.extract_strided_slice %72 {offsets = [0, 0], sizes = [15, 128], strides = [1, 1]} : vector<16x128xf32> to vector<15x128xf32>
    %75 = tpu.concatenate %73, %74 in 0 : vector<1x128xf32>, vector<15x128xf32> -> vector<16x128xf32>
    %cst_17 = arith.constant 0xFF800000 : f32
    %76 = vector.broadcast %cst_17 : f32 to vector<16x128xf32>
    %77 = arith.select %29, %75, %76 : vector<16x128xi1>, vector<16x128xf32>
    %78 = vector.extract_strided_slice %72 {offsets = [1, 0], sizes = [15, 128], strides = [1, 1]} : vector<16x128xf32> to vector<15x128xf32>
    %79 = vector.extract_strided_slice %72 {offsets = [0, 0], sizes = [1, 128], strides = [1, 1]} : vector<16x128xf32> to vector<1x128xf32>
    %80 = tpu.concatenate %78, %79 in 0 : vector<15x128xf32>, vector<1x128xf32> -> vector<16x128xf32>
    %cst_18 = arith.constant 0xFF800000 : f32
    %81 = vector.broadcast %cst_18 : f32 to vector<16x128xf32>
    %82 = arith.select %31, %80, %81 : vector<16x128xi1>, vector<16x128xf32>
    %83 = arith.maximumf %77, %82 : vector<16x128xf32>
    %84 = arith.maximumf %83, %72 : vector<16x128xf32>
    %85 = arith.subf %23, %84 : vector<16x128xf32>
    %cst_19 = arith.constant 0.000000e+00 : f32
    %86 = vector.broadcast %cst_19 : f32 to vector<16x128xf32>
    %87 = arith.maximumf %85, %86 : vector<16x128xf32>
    %88 = vector.extract_strided_slice %60 {offsets = [15, 0], sizes = [1, 128], strides = [1, 1]} : vector<16x128xf32> to vector<1x128xf32>
    %89 = vector.extract_strided_slice %60 {offsets = [0, 0], sizes = [15, 128], strides = [1, 1]} : vector<16x128xf32> to vector<15x128xf32>
    %90 = tpu.concatenate %88, %89 in 0 : vector<1x128xf32>, vector<15x128xf32> -> vector<16x128xf32>
    %cst_20 = arith.constant 0x7F800000 : f32
    %91 = vector.broadcast %cst_20 : f32 to vector<16x128xf32>
    %92 = arith.select %29, %90, %91 : vector<16x128xi1>, vector<16x128xf32>
    %93 = vector.extract_strided_slice %60 {offsets = [1, 0], sizes = [15, 128], strides = [1, 1]} : vector<16x128xf32> to vector<15x128xf32>
    %94 = vector.extract_strided_slice %60 {offsets = [0, 0], sizes = [1, 128], strides = [1, 1]} : vector<16x128xf32> to vector<1x128xf32>
    %95 = tpu.concatenate %93, %94 in 0 : vector<15x128xf32>, vector<1x128xf32> -> vector<16x128xf32>
    %cst_21 = arith.constant 0x7F800000 : f32
    %96 = vector.broadcast %cst_21 : f32 to vector<16x128xf32>
    %97 = arith.select %31, %95, %96 : vector<16x128xi1>, vector<16x128xf32>
    %98 = arith.minimumf %92, %97 : vector<16x128xf32>
    %99 = arith.minimumf %98, %60 : vector<16x128xf32>
    %100 = vector.extract_strided_slice %60 {offsets = [0, 127], sizes = [16, 1], strides = [1, 1]} : vector<16x128xf32> to vector<16x1xf32>
    %101 = vector.extract_strided_slice %60 {offsets = [0, 0], sizes = [16, 127], strides = [1, 1]} : vector<16x128xf32> to vector<16x127xf32>
    %102 = tpu.concatenate %100, %101 in 1 : vector<16x1xf32>, vector<16x127xf32> -> vector<16x128xf32>
    %cst_22 = arith.constant 0x7F800000 : f32
    %103 = vector.broadcast %cst_22 : f32 to vector<16x128xf32>
    %104 = arith.select %33, %102, %103 : vector<16x128xi1>, vector<16x128xf32>
    %105 = vector.extract_strided_slice %60 {offsets = [0, 1], sizes = [16, 127], strides = [1, 1]} : vector<16x128xf32> to vector<16x127xf32>
    %106 = vector.extract_strided_slice %60 {offsets = [0, 0], sizes = [16, 1], strides = [1, 1]} : vector<16x128xf32> to vector<16x1xf32>
    %107 = tpu.concatenate %105, %106 in 1 : vector<16x127xf32>, vector<16x1xf32> -> vector<16x128xf32>
    %cst_23 = arith.constant 0x7F800000 : f32
    %108 = vector.broadcast %cst_23 : f32 to vector<16x128xf32>
    %109 = arith.select %35, %107, %108 : vector<16x128xi1>, vector<16x128xf32>
    %110 = arith.minimumf %104, %109 : vector<16x128xf32>
    %111 = arith.minimumf %110, %60 : vector<16x128xf32>
    %112 = arith.minimumf %99, %111 : vector<16x128xf32>
    %113 = vector.extract_strided_slice %112 {offsets = [0, 127], sizes = [16, 1], strides = [1, 1]} : vector<16x128xf32> to vector<16x1xf32>
    %114 = vector.extract_strided_slice %112 {offsets = [0, 0], sizes = [16, 127], strides = [1, 1]} : vector<16x128xf32> to vector<16x127xf32>
    %115 = tpu.concatenate %113, %114 in 1 : vector<16x1xf32>, vector<16x127xf32> -> vector<16x128xf32>
    %cst_24 = arith.constant 0xFF800000 : f32
    %116 = vector.broadcast %cst_24 : f32 to vector<16x128xf32>
    %117 = arith.select %33, %115, %116 : vector<16x128xi1>, vector<16x128xf32>
    %118 = vector.extract_strided_slice %112 {offsets = [0, 1], sizes = [16, 127], strides = [1, 1]} : vector<16x128xf32> to vector<16x127xf32>
    %119 = vector.extract_strided_slice %112 {offsets = [0, 0], sizes = [16, 1], strides = [1, 1]} : vector<16x128xf32> to vector<16x1xf32>
    %120 = tpu.concatenate %118, %119 in 1 : vector<16x127xf32>, vector<16x1xf32> -> vector<16x128xf32>
    %cst_25 = arith.constant 0xFF800000 : f32
    %121 = vector.broadcast %cst_25 : f32 to vector<16x128xf32>
    %122 = arith.select %35, %120, %121 : vector<16x128xi1>, vector<16x128xf32>
    %123 = arith.maximumf %117, %122 : vector<16x128xf32>
    %124 = arith.maximumf %123, %112 : vector<16x128xf32>
    %125 = vector.extract_strided_slice %124 {offsets = [15, 0], sizes = [1, 128], strides = [1, 1]} : vector<16x128xf32> to vector<1x128xf32>
    %126 = vector.extract_strided_slice %124 {offsets = [0, 0], sizes = [15, 128], strides = [1, 1]} : vector<16x128xf32> to vector<15x128xf32>
    %127 = tpu.concatenate %125, %126 in 0 : vector<1x128xf32>, vector<15x128xf32> -> vector<16x128xf32>
    %cst_26 = arith.constant 0xFF800000 : f32
    %128 = vector.broadcast %cst_26 : f32 to vector<16x128xf32>
    %129 = arith.select %29, %127, %128 : vector<16x128xi1>, vector<16x128xf32>
    %130 = vector.extract_strided_slice %124 {offsets = [1, 0], sizes = [15, 128], strides = [1, 1]} : vector<16x128xf32> to vector<15x128xf32>
    %131 = vector.extract_strided_slice %124 {offsets = [0, 0], sizes = [1, 128], strides = [1, 1]} : vector<16x128xf32> to vector<1x128xf32>
    %132 = tpu.concatenate %130, %131 in 0 : vector<15x128xf32>, vector<1x128xf32> -> vector<16x128xf32>
    %cst_27 = arith.constant 0xFF800000 : f32
    %133 = vector.broadcast %cst_27 : f32 to vector<16x128xf32>
    %134 = arith.select %31, %132, %133 : vector<16x128xi1>, vector<16x128xf32>
    %135 = arith.maximumf %129, %134 : vector<16x128xf32>
    %136 = arith.maximumf %135, %124 : vector<16x128xf32>
    %137 = arith.subf %60, %136 : vector<16x128xf32>
    %cst_28 = arith.constant 0.000000e+00 : f32
    %138 = vector.broadcast %cst_28 : f32 to vector<16x128xf32>
    %139 = arith.maximumf %137, %138 : vector<16x128xf32>
    %140 = arith.mulf %87, %139 : vector<16x128xf32>
    %141 = arith.subf %139, %140 : vector<16x128xf32>
    %cst_29 = arith.constant 0.000000e+00 : f32
    %142 = vector.broadcast %cst_29 : f32 to vector<16x128xf32>
    %143 = arith.maximumf %141, %142 : vector<16x128xf32>
    %144 = arith.addf %87, %143 : vector<16x128xf32>
    %145 = vector.extract_strided_slice %112 {offsets = [15, 0], sizes = [1, 128], strides = [1, 1]} : vector<16x128xf32> to vector<1x128xf32>
    %146 = vector.extract_strided_slice %112 {offsets = [0, 0], sizes = [15, 128], strides = [1, 1]} : vector<16x128xf32> to vector<15x128xf32>
    %147 = tpu.concatenate %145, %146 in 0 : vector<1x128xf32>, vector<15x128xf32> -> vector<16x128xf32>
    %cst_30 = arith.constant 0x7F800000 : f32
    %148 = vector.broadcast %cst_30 : f32 to vector<16x128xf32>
    %149 = arith.select %29, %147, %148 : vector<16x128xi1>, vector<16x128xf32>
    %150 = vector.extract_strided_slice %112 {offsets = [1, 0], sizes = [15, 128], strides = [1, 1]} : vector<16x128xf32> to vector<15x128xf32>
    %151 = vector.extract_strided_slice %112 {offsets = [0, 0], sizes = [1, 128], strides = [1, 1]} : vector<16x128xf32> to vector<1x128xf32>
    %152 = tpu.concatenate %150, %151 in 0 : vector<15x128xf32>, vector<1x128xf32> -> vector<16x128xf32>
    %cst_31 = arith.constant 0x7F800000 : f32
    %153 = vector.broadcast %cst_31 : f32 to vector<16x128xf32>
    %154 = arith.select %31, %152, %153 : vector<16x128xi1>, vector<16x128xf32>
    %155 = arith.minimumf %149, %154 : vector<16x128xf32>
    %156 = arith.minimumf %155, %112 : vector<16x128xf32>
    %157 = vector.extract_strided_slice %112 {offsets = [0, 127], sizes = [16, 1], strides = [1, 1]} : vector<16x128xf32> to vector<16x1xf32>
    %158 = vector.extract_strided_slice %112 {offsets = [0, 0], sizes = [16, 127], strides = [1, 1]} : vector<16x128xf32> to vector<16x127xf32>
    %159 = tpu.concatenate %157, %158 in 1 : vector<16x1xf32>, vector<16x127xf32> -> vector<16x128xf32>
    %cst_32 = arith.constant 0x7F800000 : f32
    %160 = vector.broadcast %cst_32 : f32 to vector<16x128xf32>
    %161 = arith.select %33, %159, %160 : vector<16x128xi1>, vector<16x128xf32>
    %162 = vector.extract_strided_slice %112 {offsets = [0, 1], sizes = [16, 127], strides = [1, 1]} : vector<16x128xf32> to vector<16x127xf32>
    %163 = vector.extract_strided_slice %112 {offsets = [0, 0], sizes = [16, 1], strides = [1, 1]} : vector<16x128xf32> to vector<16x1xf32>
    %164 = tpu.concatenate %162, %163 in 1 : vector<16x127xf32>, vector<16x1xf32> -> vector<16x128xf32>
    %cst_33 = arith.constant 0x7F800000 : f32
    %165 = vector.broadcast %cst_33 : f32 to vector<16x128xf32>
    %166 = arith.select %35, %164, %165 : vector<16x128xi1>, vector<16x128xf32>
    %167 = arith.minimumf %161, %166 : vector<16x128xf32>
    %168 = arith.minimumf %167, %112 : vector<16x128xf32>
    %169 = arith.minimumf %156, %168 : vector<16x128xf32>
    %170 = vector.extract_strided_slice %169 {offsets = [0, 127], sizes = [16, 1], strides = [1, 1]} : vector<16x128xf32> to vector<16x1xf32>
    %171 = vector.extract_strided_slice %169 {offsets = [0, 0], sizes = [16, 127], strides = [1, 1]} : vector<16x128xf32> to vector<16x127xf32>
    %172 = tpu.concatenate %170, %171 in 1 : vector<16x1xf32>, vector<16x127xf32> -> vector<16x128xf32>
    %cst_34 = arith.constant 0xFF800000 : f32
    %173 = vector.broadcast %cst_34 : f32 to vector<16x128xf32>
    %174 = arith.select %33, %172, %173 : vector<16x128xi1>, vector<16x128xf32>
    %175 = vector.extract_strided_slice %169 {offsets = [0, 1], sizes = [16, 127], strides = [1, 1]} : vector<16x128xf32> to vector<16x127xf32>
    %176 = vector.extract_strided_slice %169 {offsets = [0, 0], sizes = [16, 1], strides = [1, 1]} : vector<16x128xf32> to vector<16x1xf32>
    %177 = tpu.concatenate %175, %176 in 1 : vector<16x127xf32>, vector<16x1xf32> -> vector<16x128xf32>
    %cst_35 = arith.constant 0xFF800000 : f32
    %178 = vector.broadcast %cst_35 : f32 to vector<16x128xf32>
    %179 = arith.select %35, %177, %178 : vector<16x128xi1>, vector<16x128xf32>
    %180 = arith.maximumf %174, %179 : vector<16x128xf32>
    %181 = arith.maximumf %180, %169 : vector<16x128xf32>
    %182 = vector.extract_strided_slice %181 {offsets = [15, 0], sizes = [1, 128], strides = [1, 1]} : vector<16x128xf32> to vector<1x128xf32>
    %183 = vector.extract_strided_slice %181 {offsets = [0, 0], sizes = [15, 128], strides = [1, 1]} : vector<16x128xf32> to vector<15x128xf32>
    %184 = tpu.concatenate %182, %183 in 0 : vector<1x128xf32>, vector<15x128xf32> -> vector<16x128xf32>
    %cst_36 = arith.constant 0xFF800000 : f32
    %185 = vector.broadcast %cst_36 : f32 to vector<16x128xf32>
    %186 = arith.select %29, %184, %185 : vector<16x128xi1>, vector<16x128xf32>
    %187 = vector.extract_strided_slice %181 {offsets = [1, 0], sizes = [15, 128], strides = [1, 1]} : vector<16x128xf32> to vector<15x128xf32>
    %188 = vector.extract_strided_slice %181 {offsets = [0, 0], sizes = [1, 128], strides = [1, 1]} : vector<16x128xf32> to vector<1x128xf32>
    %189 = tpu.concatenate %187, %188 in 0 : vector<15x128xf32>, vector<1x128xf32> -> vector<16x128xf32>
    %cst_37 = arith.constant 0xFF800000 : f32
    %190 = vector.broadcast %cst_37 : f32 to vector<16x128xf32>
    %191 = arith.select %31, %189, %190 : vector<16x128xi1>, vector<16x128xf32>
    %192 = arith.maximumf %186, %191 : vector<16x128xf32>
    %193 = arith.maximumf %192, %181 : vector<16x128xf32>
    %194 = arith.subf %112, %193 : vector<16x128xf32>
    %cst_38 = arith.constant 0.000000e+00 : f32
    %195 = vector.broadcast %cst_38 : f32 to vector<16x128xf32>
    %196 = arith.maximumf %194, %195 : vector<16x128xf32>
    %197 = arith.mulf %144, %196 : vector<16x128xf32>
    %198 = arith.subf %196, %197 : vector<16x128xf32>
    %cst_39 = arith.constant 0.000000e+00 : f32
    %199 = vector.broadcast %cst_39 : f32 to vector<16x128xf32>
    %200 = arith.maximumf %198, %199 : vector<16x128xf32>
    %201 = arith.addf %144, %200 : vector<16x128xf32>
    %202 = vector.extract_strided_slice %169 {offsets = [15, 0], sizes = [1, 128], strides = [1, 1]} : vector<16x128xf32> to vector<1x128xf32>
    %203 = vector.extract_strided_slice %169 {offsets = [0, 0], sizes = [15, 128], strides = [1, 1]} : vector<16x128xf32> to vector<15x128xf32>
    %204 = tpu.concatenate %202, %203 in 0 : vector<1x128xf32>, vector<15x128xf32> -> vector<16x128xf32>
    %cst_40 = arith.constant 0x7F800000 : f32
    %205 = vector.broadcast %cst_40 : f32 to vector<16x128xf32>
    %206 = arith.select %29, %204, %205 : vector<16x128xi1>, vector<16x128xf32>
    %207 = vector.extract_strided_slice %169 {offsets = [1, 0], sizes = [15, 128], strides = [1, 1]} : vector<16x128xf32> to vector<15x128xf32>
    %208 = vector.extract_strided_slice %169 {offsets = [0, 0], sizes = [1, 128], strides = [1, 1]} : vector<16x128xf32> to vector<1x128xf32>
    %209 = tpu.concatenate %207, %208 in 0 : vector<15x128xf32>, vector<1x128xf32> -> vector<16x128xf32>
    %cst_41 = arith.constant 0x7F800000 : f32
    %210 = vector.broadcast %cst_41 : f32 to vector<16x128xf32>
    %211 = arith.select %31, %209, %210 : vector<16x128xi1>, vector<16x128xf32>
    %212 = arith.minimumf %206, %211 : vector<16x128xf32>
    %213 = arith.minimumf %212, %169 : vector<16x128xf32>
    %214 = vector.extract_strided_slice %169 {offsets = [0, 127], sizes = [16, 1], strides = [1, 1]} : vector<16x128xf32> to vector<16x1xf32>
    %215 = vector.extract_strided_slice %169 {offsets = [0, 0], sizes = [16, 127], strides = [1, 1]} : vector<16x128xf32> to vector<16x127xf32>
    %216 = tpu.concatenate %214, %215 in 1 : vector<16x1xf32>, vector<16x127xf32> -> vector<16x128xf32>
    %cst_42 = arith.constant 0x7F800000 : f32
    %217 = vector.broadcast %cst_42 : f32 to vector<16x128xf32>
    %218 = arith.select %33, %216, %217 : vector<16x128xi1>, vector<16x128xf32>
    %219 = vector.extract_strided_slice %169 {offsets = [0, 1], sizes = [16, 127], strides = [1, 1]} : vector<16x128xf32> to vector<16x127xf32>
    %220 = vector.extract_strided_slice %169 {offsets = [0, 0], sizes = [16, 1], strides = [1, 1]} : vector<16x128xf32> to vector<16x1xf32>
    %221 = tpu.concatenate %219, %220 in 1 : vector<16x127xf32>, vector<16x1xf32> -> vector<16x128xf32>
    %cst_43 = arith.constant 0x7F800000 : f32
    %222 = vector.broadcast %cst_43 : f32 to vector<16x128xf32>
    %223 = arith.select %35, %221, %222 : vector<16x128xi1>, vector<16x128xf32>
    %224 = arith.minimumf %218, %223 : vector<16x128xf32>
    %225 = arith.minimumf %224, %169 : vector<16x128xf32>
    %226 = arith.minimumf %213, %225 : vector<16x128xf32>
    %227 = vector.extract_strided_slice %226 {offsets = [0, 127], sizes = [16, 1], strides = [1, 1]} : vector<16x128xf32> to vector<16x1xf32>
    %228 = vector.extract_strided_slice %226 {offsets = [0, 0], sizes = [16, 127], strides = [1, 1]} : vector<16x128xf32> to vector<16x127xf32>
    %229 = tpu.concatenate %227, %228 in 1 : vector<16x1xf32>, vector<16x127xf32> -> vector<16x128xf32>
    %cst_44 = arith.constant 0xFF800000 : f32
    %230 = vector.broadcast %cst_44 : f32 to vector<16x128xf32>
    %231 = arith.select %33, %229, %230 : vector<16x128xi1>, vector<16x128xf32>
    %232 = vector.extract_strided_slice %226 {offsets = [0, 1], sizes = [16, 127], strides = [1, 1]} : vector<16x128xf32> to vector<16x127xf32>
    %233 = vector.extract_strided_slice %226 {offsets = [0, 0], sizes = [16, 1], strides = [1, 1]} : vector<16x128xf32> to vector<16x1xf32>
    %234 = tpu.concatenate %232, %233 in 1 : vector<16x127xf32>, vector<16x1xf32> -> vector<16x128xf32>
    %cst_45 = arith.constant 0xFF800000 : f32
    %235 = vector.broadcast %cst_45 : f32 to vector<16x128xf32>
    %236 = arith.select %35, %234, %235 : vector<16x128xi1>, vector<16x128xf32>
    %237 = arith.maximumf %231, %236 : vector<16x128xf32>
    %238 = arith.maximumf %237, %226 : vector<16x128xf32>
    %239 = vector.extract_strided_slice %238 {offsets = [15, 0], sizes = [1, 128], strides = [1, 1]} : vector<16x128xf32> to vector<1x128xf32>
    %240 = vector.extract_strided_slice %238 {offsets = [0, 0], sizes = [15, 128], strides = [1, 1]} : vector<16x128xf32> to vector<15x128xf32>
    %241 = tpu.concatenate %239, %240 in 0 : vector<1x128xf32>, vector<15x128xf32> -> vector<16x128xf32>
    %cst_46 = arith.constant 0xFF800000 : f32
    %242 = vector.broadcast %cst_46 : f32 to vector<16x128xf32>
    %243 = arith.select %29, %241, %242 : vector<16x128xi1>, vector<16x128xf32>
    %244 = vector.extract_strided_slice %238 {offsets = [1, 0], sizes = [15, 128], strides = [1, 1]} : vector<16x128xf32> to vector<15x128xf32>
    %245 = vector.extract_strided_slice %238 {offsets = [0, 0], sizes = [1, 128], strides = [1, 1]} : vector<16x128xf32> to vector<1x128xf32>
    %246 = tpu.concatenate %244, %245 in 0 : vector<15x128xf32>, vector<1x128xf32> -> vector<16x128xf32>
    %cst_47 = arith.constant 0xFF800000 : f32
    %247 = vector.broadcast %cst_47 : f32 to vector<16x128xf32>
    %248 = arith.select %31, %246, %247 : vector<16x128xi1>, vector<16x128xf32>
    %249 = arith.maximumf %243, %248 : vector<16x128xf32>
    %250 = arith.maximumf %249, %238 : vector<16x128xf32>
    %251 = arith.subf %169, %250 : vector<16x128xf32>
    %cst_48 = arith.constant 0.000000e+00 : f32
    %252 = vector.broadcast %cst_48 : f32 to vector<16x128xf32>
    %253 = arith.maximumf %251, %252 : vector<16x128xf32>
    %254 = arith.mulf %201, %253 : vector<16x128xf32>
    %255 = arith.subf %253, %254 : vector<16x128xf32>
    %cst_49 = arith.constant 0.000000e+00 : f32
    %256 = vector.broadcast %cst_49 : f32 to vector<16x128xf32>
    %257 = arith.maximumf %255, %256 : vector<16x128xf32>
    %258 = arith.addf %201, %257 : vector<16x128xf32>
    %259 = vector.extract_strided_slice %0 {offsets = [15, 0], sizes = [1, 128], strides = [1, 1]} : vector<16x128xf32> to vector<1x128xf32>
    %260 = vector.extract_strided_slice %0 {offsets = [0, 0], sizes = [15, 128], strides = [1, 1]} : vector<16x128xf32> to vector<15x128xf32>
    %261 = tpu.concatenate %259, %260 in 0 : vector<1x128xf32>, vector<15x128xf32> -> vector<16x128xf32>
    %cst_50 = arith.constant 0x7F800000 : f32
    %262 = vector.broadcast %cst_50 : f32 to vector<16x128xf32>
    %263 = arith.select %29, %261, %262 : vector<16x128xi1>, vector<16x128xf32>
    %264 = vector.extract_strided_slice %0 {offsets = [1, 0], sizes = [15, 128], strides = [1, 1]} : vector<16x128xf32> to vector<15x128xf32>
    %265 = vector.extract_strided_slice %0 {offsets = [0, 0], sizes = [1, 128], strides = [1, 1]} : vector<16x128xf32> to vector<1x128xf32>
    %266 = tpu.concatenate %264, %265 in 0 : vector<15x128xf32>, vector<1x128xf32> -> vector<16x128xf32>
    %cst_51 = arith.constant 0x7F800000 : f32
    %267 = vector.broadcast %cst_51 : f32 to vector<16x128xf32>
    %268 = arith.select %31, %266, %267 : vector<16x128xi1>, vector<16x128xf32>
    %269 = arith.minimumf %263, %268 : vector<16x128xf32>
    %270 = arith.minimumf %269, %0 : vector<16x128xf32>
    %271 = vector.extract_strided_slice %0 {offsets = [0, 127], sizes = [16, 1], strides = [1, 1]} : vector<16x128xf32> to vector<16x1xf32>
    %272 = vector.extract_strided_slice %0 {offsets = [0, 0], sizes = [16, 127], strides = [1, 1]} : vector<16x128xf32> to vector<16x127xf32>
    %273 = tpu.concatenate %271, %272 in 1 : vector<16x1xf32>, vector<16x127xf32> -> vector<16x128xf32>
    %cst_52 = arith.constant 0x7F800000 : f32
    %274 = vector.broadcast %cst_52 : f32 to vector<16x128xf32>
    %275 = arith.select %33, %273, %274 : vector<16x128xi1>, vector<16x128xf32>
    %276 = vector.extract_strided_slice %0 {offsets = [0, 1], sizes = [16, 127], strides = [1, 1]} : vector<16x128xf32> to vector<16x127xf32>
    %277 = vector.extract_strided_slice %0 {offsets = [0, 0], sizes = [16, 1], strides = [1, 1]} : vector<16x128xf32> to vector<16x1xf32>
    %278 = tpu.concatenate %276, %277 in 1 : vector<16x127xf32>, vector<16x1xf32> -> vector<16x128xf32>
    %cst_53 = arith.constant 0x7F800000 : f32
    %279 = vector.broadcast %cst_53 : f32 to vector<16x128xf32>
    %280 = arith.select %35, %278, %279 : vector<16x128xi1>, vector<16x128xf32>
    %281 = arith.minimumf %275, %280 : vector<16x128xf32>
    %282 = arith.minimumf %281, %0 : vector<16x128xf32>
    %283 = arith.minimumf %270, %282 : vector<16x128xf32>
    %284 = vector.extract_strided_slice %283 {offsets = [0, 127], sizes = [16, 1], strides = [1, 1]} : vector<16x128xf32> to vector<16x1xf32>
    %285 = vector.extract_strided_slice %283 {offsets = [0, 0], sizes = [16, 127], strides = [1, 1]} : vector<16x128xf32> to vector<16x127xf32>
    %286 = tpu.concatenate %284, %285 in 1 : vector<16x1xf32>, vector<16x127xf32> -> vector<16x128xf32>
    %cst_54 = arith.constant 0xFF800000 : f32
    %287 = vector.broadcast %cst_54 : f32 to vector<16x128xf32>
    %288 = arith.select %33, %286, %287 : vector<16x128xi1>, vector<16x128xf32>
    %289 = vector.extract_strided_slice %283 {offsets = [0, 1], sizes = [16, 127], strides = [1, 1]} : vector<16x128xf32> to vector<16x127xf32>
    %290 = vector.extract_strided_slice %283 {offsets = [0, 0], sizes = [16, 1], strides = [1, 1]} : vector<16x128xf32> to vector<16x1xf32>
    %291 = tpu.concatenate %289, %290 in 1 : vector<16x127xf32>, vector<16x1xf32> -> vector<16x128xf32>
    %cst_55 = arith.constant 0xFF800000 : f32
    %292 = vector.broadcast %cst_55 : f32 to vector<16x128xf32>
    %293 = arith.select %35, %291, %292 : vector<16x128xi1>, vector<16x128xf32>
    %294 = arith.maximumf %288, %293 : vector<16x128xf32>
    %295 = arith.maximumf %294, %283 : vector<16x128xf32>
    %296 = vector.extract_strided_slice %295 {offsets = [15, 0], sizes = [1, 128], strides = [1, 1]} : vector<16x128xf32> to vector<1x128xf32>
    %297 = vector.extract_strided_slice %295 {offsets = [0, 0], sizes = [15, 128], strides = [1, 1]} : vector<16x128xf32> to vector<15x128xf32>
    %298 = tpu.concatenate %296, %297 in 0 : vector<1x128xf32>, vector<15x128xf32> -> vector<16x128xf32>
    %cst_56 = arith.constant 0xFF800000 : f32
    %299 = vector.broadcast %cst_56 : f32 to vector<16x128xf32>
    %300 = arith.select %29, %298, %299 : vector<16x128xi1>, vector<16x128xf32>
    %301 = vector.extract_strided_slice %295 {offsets = [1, 0], sizes = [15, 128], strides = [1, 1]} : vector<16x128xf32> to vector<15x128xf32>
    %302 = vector.extract_strided_slice %295 {offsets = [0, 0], sizes = [1, 128], strides = [1, 1]} : vector<16x128xf32> to vector<1x128xf32>
    %303 = tpu.concatenate %301, %302 in 0 : vector<15x128xf32>, vector<1x128xf32> -> vector<16x128xf32>
    %cst_57 = arith.constant 0xFF800000 : f32
    %304 = vector.broadcast %cst_57 : f32 to vector<16x128xf32>
    %305 = arith.select %31, %303, %304 : vector<16x128xi1>, vector<16x128xf32>
    %306 = arith.maximumf %300, %305 : vector<16x128xf32>
    %307 = arith.maximumf %306, %295 : vector<16x128xf32>
    %308 = arith.subf %0, %307 : vector<16x128xf32>
    %cst_58 = arith.constant 0.000000e+00 : f32
    %309 = vector.broadcast %cst_58 : f32 to vector<16x128xf32>
    %310 = arith.maximumf %308, %309 : vector<16x128xf32>
    %311 = vector.extract_strided_slice %283 {offsets = [15, 0], sizes = [1, 128], strides = [1, 1]} : vector<16x128xf32> to vector<1x128xf32>
    %312 = vector.extract_strided_slice %283 {offsets = [0, 0], sizes = [15, 128], strides = [1, 1]} : vector<16x128xf32> to vector<15x128xf32>
    %313 = tpu.concatenate %311, %312 in 0 : vector<1x128xf32>, vector<15x128xf32> -> vector<16x128xf32>
    %cst_59 = arith.constant 0x7F800000 : f32
    %314 = vector.broadcast %cst_59 : f32 to vector<16x128xf32>
    %315 = arith.select %29, %313, %314 : vector<16x128xi1>, vector<16x128xf32>
    %316 = vector.extract_strided_slice %283 {offsets = [1, 0], sizes = [15, 128], strides = [1, 1]} : vector<16x128xf32> to vector<15x128xf32>
    %317 = vector.extract_strided_slice %283 {offsets = [0, 0], sizes = [1, 128], strides = [1, 1]} : vector<16x128xf32> to vector<1x128xf32>
    %318 = tpu.concatenate %316, %317 in 0 : vector<15x128xf32>, vector<1x128xf32> -> vector<16x128xf32>
    %cst_60 = arith.constant 0x7F800000 : f32
    %319 = vector.broadcast %cst_60 : f32 to vector<16x128xf32>
    %320 = arith.select %31, %318, %319 : vector<16x128xi1>, vector<16x128xf32>
    %321 = arith.minimumf %315, %320 : vector<16x128xf32>
    %322 = arith.minimumf %321, %283 : vector<16x128xf32>
    %323 = vector.extract_strided_slice %283 {offsets = [0, 127], sizes = [16, 1], strides = [1, 1]} : vector<16x128xf32> to vector<16x1xf32>
    %324 = vector.extract_strided_slice %283 {offsets = [0, 0], sizes = [16, 127], strides = [1, 1]} : vector<16x128xf32> to vector<16x127xf32>
    %325 = tpu.concatenate %323, %324 in 1 : vector<16x1xf32>, vector<16x127xf32> -> vector<16x128xf32>
    %cst_61 = arith.constant 0x7F800000 : f32
    %326 = vector.broadcast %cst_61 : f32 to vector<16x128xf32>
    %327 = arith.select %33, %325, %326 : vector<16x128xi1>, vector<16x128xf32>
    %328 = vector.extract_strided_slice %283 {offsets = [0, 1], sizes = [16, 127], strides = [1, 1]} : vector<16x128xf32> to vector<16x127xf32>
    %329 = vector.extract_strided_slice %283 {offsets = [0, 0], sizes = [16, 1], strides = [1, 1]} : vector<16x128xf32> to vector<16x1xf32>
    %330 = tpu.concatenate %328, %329 in 1 : vector<16x127xf32>, vector<16x1xf32> -> vector<16x128xf32>
    %cst_62 = arith.constant 0x7F800000 : f32
    %331 = vector.broadcast %cst_62 : f32 to vector<16x128xf32>
    %332 = arith.select %35, %330, %331 : vector<16x128xi1>, vector<16x128xf32>
    %333 = arith.minimumf %327, %332 : vector<16x128xf32>
    %334 = arith.minimumf %333, %283 : vector<16x128xf32>
    %335 = arith.minimumf %322, %334 : vector<16x128xf32>
    %336 = vector.extract_strided_slice %335 {offsets = [0, 127], sizes = [16, 1], strides = [1, 1]} : vector<16x128xf32> to vector<16x1xf32>
    %337 = vector.extract_strided_slice %335 {offsets = [0, 0], sizes = [16, 127], strides = [1, 1]} : vector<16x128xf32> to vector<16x127xf32>
    %338 = tpu.concatenate %336, %337 in 1 : vector<16x1xf32>, vector<16x127xf32> -> vector<16x128xf32>
    %cst_63 = arith.constant 0xFF800000 : f32
    %339 = vector.broadcast %cst_63 : f32 to vector<16x128xf32>
    %340 = arith.select %33, %338, %339 : vector<16x128xi1>, vector<16x128xf32>
    %341 = vector.extract_strided_slice %335 {offsets = [0, 1], sizes = [16, 127], strides = [1, 1]} : vector<16x128xf32> to vector<16x127xf32>
    %342 = vector.extract_strided_slice %335 {offsets = [0, 0], sizes = [16, 1], strides = [1, 1]} : vector<16x128xf32> to vector<16x1xf32>
    %343 = tpu.concatenate %341, %342 in 1 : vector<16x127xf32>, vector<16x1xf32> -> vector<16x128xf32>
    %cst_64 = arith.constant 0xFF800000 : f32
    %344 = vector.broadcast %cst_64 : f32 to vector<16x128xf32>
    %345 = arith.select %35, %343, %344 : vector<16x128xi1>, vector<16x128xf32>
    %346 = arith.maximumf %340, %345 : vector<16x128xf32>
    %347 = arith.maximumf %346, %335 : vector<16x128xf32>
    %348 = vector.extract_strided_slice %347 {offsets = [15, 0], sizes = [1, 128], strides = [1, 1]} : vector<16x128xf32> to vector<1x128xf32>
    %349 = vector.extract_strided_slice %347 {offsets = [0, 0], sizes = [15, 128], strides = [1, 1]} : vector<16x128xf32> to vector<15x128xf32>
    %350 = tpu.concatenate %348, %349 in 0 : vector<1x128xf32>, vector<15x128xf32> -> vector<16x128xf32>
    %cst_65 = arith.constant 0xFF800000 : f32
    %351 = vector.broadcast %cst_65 : f32 to vector<16x128xf32>
    %352 = arith.select %29, %350, %351 : vector<16x128xi1>, vector<16x128xf32>
    %353 = vector.extract_strided_slice %347 {offsets = [1, 0], sizes = [15, 128], strides = [1, 1]} : vector<16x128xf32> to vector<15x128xf32>
    %354 = vector.extract_strided_slice %347 {offsets = [0, 0], sizes = [1, 128], strides = [1, 1]} : vector<16x128xf32> to vector<1x128xf32>
    %355 = tpu.concatenate %353, %354 in 0 : vector<15x128xf32>, vector<1x128xf32> -> vector<16x128xf32>
    %cst_66 = arith.constant 0xFF800000 : f32
    %356 = vector.broadcast %cst_66 : f32 to vector<16x128xf32>
    %357 = arith.select %31, %355, %356 : vector<16x128xi1>, vector<16x128xf32>
    %358 = arith.maximumf %352, %357 : vector<16x128xf32>
    %359 = arith.maximumf %358, %347 : vector<16x128xf32>
    %360 = arith.subf %283, %359 : vector<16x128xf32>
    %cst_67 = arith.constant 0.000000e+00 : f32
    %361 = vector.broadcast %cst_67 : f32 to vector<16x128xf32>
    %362 = arith.maximumf %360, %361 : vector<16x128xf32>
    %363 = arith.mulf %310, %362 : vector<16x128xf32>
    %364 = arith.subf %362, %363 : vector<16x128xf32>
    %cst_68 = arith.constant 0.000000e+00 : f32
    %365 = vector.broadcast %cst_68 : f32 to vector<16x128xf32>
    %366 = arith.maximumf %364, %365 : vector<16x128xf32>
    %367 = arith.addf %310, %366 : vector<16x128xf32>
    %368 = vector.extract_strided_slice %335 {offsets = [15, 0], sizes = [1, 128], strides = [1, 1]} : vector<16x128xf32> to vector<1x128xf32>
    %369 = vector.extract_strided_slice %335 {offsets = [0, 0], sizes = [15, 128], strides = [1, 1]} : vector<16x128xf32> to vector<15x128xf32>
    %370 = tpu.concatenate %368, %369 in 0 : vector<1x128xf32>, vector<15x128xf32> -> vector<16x128xf32>
    %cst_69 = arith.constant 0x7F800000 : f32
    %371 = vector.broadcast %cst_69 : f32 to vector<16x128xf32>
    %372 = arith.select %29, %370, %371 : vector<16x128xi1>, vector<16x128xf32>
    %373 = vector.extract_strided_slice %335 {offsets = [1, 0], sizes = [15, 128], strides = [1, 1]} : vector<16x128xf32> to vector<15x128xf32>
    %374 = vector.extract_strided_slice %335 {offsets = [0, 0], sizes = [1, 128], strides = [1, 1]} : vector<16x128xf32> to vector<1x128xf32>
    %375 = tpu.concatenate %373, %374 in 0 : vector<15x128xf32>, vector<1x128xf32> -> vector<16x128xf32>
    %cst_70 = arith.constant 0x7F800000 : f32
    %376 = vector.broadcast %cst_70 : f32 to vector<16x128xf32>
    %377 = arith.select %31, %375, %376 : vector<16x128xi1>, vector<16x128xf32>
    %378 = arith.minimumf %372, %377 : vector<16x128xf32>
    %379 = arith.minimumf %378, %335 : vector<16x128xf32>
    %380 = vector.extract_strided_slice %335 {offsets = [0, 127], sizes = [16, 1], strides = [1, 1]} : vector<16x128xf32> to vector<16x1xf32>
    %381 = vector.extract_strided_slice %335 {offsets = [0, 0], sizes = [16, 127], strides = [1, 1]} : vector<16x128xf32> to vector<16x127xf32>
    %382 = tpu.concatenate %380, %381 in 1 : vector<16x1xf32>, vector<16x127xf32> -> vector<16x128xf32>
    %cst_71 = arith.constant 0x7F800000 : f32
    %383 = vector.broadcast %cst_71 : f32 to vector<16x128xf32>
    %384 = arith.select %33, %382, %383 : vector<16x128xi1>, vector<16x128xf32>
    %385 = vector.extract_strided_slice %335 {offsets = [0, 1], sizes = [16, 127], strides = [1, 1]} : vector<16x128xf32> to vector<16x127xf32>
    %386 = vector.extract_strided_slice %335 {offsets = [0, 0], sizes = [16, 1], strides = [1, 1]} : vector<16x128xf32> to vector<16x1xf32>
    %387 = tpu.concatenate %385, %386 in 1 : vector<16x127xf32>, vector<16x1xf32> -> vector<16x128xf32>
    %cst_72 = arith.constant 0x7F800000 : f32
    %388 = vector.broadcast %cst_72 : f32 to vector<16x128xf32>
    %389 = arith.select %35, %387, %388 : vector<16x128xi1>, vector<16x128xf32>
    %390 = arith.minimumf %384, %389 : vector<16x128xf32>
    %391 = arith.minimumf %390, %335 : vector<16x128xf32>
    %392 = arith.minimumf %379, %391 : vector<16x128xf32>
    %393 = vector.extract_strided_slice %392 {offsets = [0, 127], sizes = [16, 1], strides = [1, 1]} : vector<16x128xf32> to vector<16x1xf32>
    %394 = vector.extract_strided_slice %392 {offsets = [0, 0], sizes = [16, 127], strides = [1, 1]} : vector<16x128xf32> to vector<16x127xf32>
    %395 = tpu.concatenate %393, %394 in 1 : vector<16x1xf32>, vector<16x127xf32> -> vector<16x128xf32>
    %cst_73 = arith.constant 0xFF800000 : f32
    %396 = vector.broadcast %cst_73 : f32 to vector<16x128xf32>
    %397 = arith.select %33, %395, %396 : vector<16x128xi1>, vector<16x128xf32>
    %398 = vector.extract_strided_slice %392 {offsets = [0, 1], sizes = [16, 127], strides = [1, 1]} : vector<16x128xf32> to vector<16x127xf32>
    %399 = vector.extract_strided_slice %392 {offsets = [0, 0], sizes = [16, 1], strides = [1, 1]} : vector<16x128xf32> to vector<16x1xf32>
    %400 = tpu.concatenate %398, %399 in 1 : vector<16x127xf32>, vector<16x1xf32> -> vector<16x128xf32>
    %cst_74 = arith.constant 0xFF800000 : f32
    %401 = vector.broadcast %cst_74 : f32 to vector<16x128xf32>
    %402 = arith.select %35, %400, %401 : vector<16x128xi1>, vector<16x128xf32>
    %403 = arith.maximumf %397, %402 : vector<16x128xf32>
    %404 = arith.maximumf %403, %392 : vector<16x128xf32>
    %405 = vector.extract_strided_slice %404 {offsets = [15, 0], sizes = [1, 128], strides = [1, 1]} : vector<16x128xf32> to vector<1x128xf32>
    %406 = vector.extract_strided_slice %404 {offsets = [0, 0], sizes = [15, 128], strides = [1, 1]} : vector<16x128xf32> to vector<15x128xf32>
    %407 = tpu.concatenate %405, %406 in 0 : vector<1x128xf32>, vector<15x128xf32> -> vector<16x128xf32>
    %cst_75 = arith.constant 0xFF800000 : f32
    %408 = vector.broadcast %cst_75 : f32 to vector<16x128xf32>
    %409 = arith.select %29, %407, %408 : vector<16x128xi1>, vector<16x128xf32>
    %410 = vector.extract_strided_slice %404 {offsets = [1, 0], sizes = [15, 128], strides = [1, 1]} : vector<16x128xf32> to vector<15x128xf32>
    %411 = vector.extract_strided_slice %404 {offsets = [0, 0], sizes = [1, 128], strides = [1, 1]} : vector<16x128xf32> to vector<1x128xf32>
    %412 = tpu.concatenate %410, %411 in 0 : vector<15x128xf32>, vector<1x128xf32> -> vector<16x128xf32>
    %cst_76 = arith.constant 0xFF800000 : f32
    %413 = vector.broadcast %cst_76 : f32 to vector<16x128xf32>
    %414 = arith.select %31, %412, %413 : vector<16x128xi1>, vector<16x128xf32>
    %415 = arith.maximumf %409, %414 : vector<16x128xf32>
    %416 = arith.maximumf %415, %404 : vector<16x128xf32>
    %417 = arith.subf %335, %416 : vector<16x128xf32>
    %cst_77 = arith.constant 0.000000e+00 : f32
    %418 = vector.broadcast %cst_77 : f32 to vector<16x128xf32>
    %419 = arith.maximumf %417, %418 : vector<16x128xf32>
    %420 = arith.mulf %367, %419 : vector<16x128xf32>
    %421 = arith.subf %419, %420 : vector<16x128xf32>
    %cst_78 = arith.constant 0.000000e+00 : f32
    %422 = vector.broadcast %cst_78 : f32 to vector<16x128xf32>
    %423 = arith.maximumf %421, %422 : vector<16x128xf32>
    %424 = arith.addf %367, %423 : vector<16x128xf32>
    %425 = vector.extract_strided_slice %392 {offsets = [15, 0], sizes = [1, 128], strides = [1, 1]} : vector<16x128xf32> to vector<1x128xf32>
    %426 = vector.extract_strided_slice %392 {offsets = [0, 0], sizes = [15, 128], strides = [1, 1]} : vector<16x128xf32> to vector<15x128xf32>
    %427 = tpu.concatenate %425, %426 in 0 : vector<1x128xf32>, vector<15x128xf32> -> vector<16x128xf32>
    %cst_79 = arith.constant 0x7F800000 : f32
    %428 = vector.broadcast %cst_79 : f32 to vector<16x128xf32>
    %429 = arith.select %29, %427, %428 : vector<16x128xi1>, vector<16x128xf32>
    %430 = vector.extract_strided_slice %392 {offsets = [1, 0], sizes = [15, 128], strides = [1, 1]} : vector<16x128xf32> to vector<15x128xf32>
    %431 = vector.extract_strided_slice %392 {offsets = [0, 0], sizes = [1, 128], strides = [1, 1]} : vector<16x128xf32> to vector<1x128xf32>
    %432 = tpu.concatenate %430, %431 in 0 : vector<15x128xf32>, vector<1x128xf32> -> vector<16x128xf32>
    %cst_80 = arith.constant 0x7F800000 : f32
    %433 = vector.broadcast %cst_80 : f32 to vector<16x128xf32>
    %434 = arith.select %31, %432, %433 : vector<16x128xi1>, vector<16x128xf32>
    %435 = arith.minimumf %429, %434 : vector<16x128xf32>
    %436 = arith.minimumf %435, %392 : vector<16x128xf32>
    %437 = vector.extract_strided_slice %392 {offsets = [0, 127], sizes = [16, 1], strides = [1, 1]} : vector<16x128xf32> to vector<16x1xf32>
    %438 = vector.extract_strided_slice %392 {offsets = [0, 0], sizes = [16, 127], strides = [1, 1]} : vector<16x128xf32> to vector<16x127xf32>
    %439 = tpu.concatenate %437, %438 in 1 : vector<16x1xf32>, vector<16x127xf32> -> vector<16x128xf32>
    %cst_81 = arith.constant 0x7F800000 : f32
    %440 = vector.broadcast %cst_81 : f32 to vector<16x128xf32>
    %441 = arith.select %33, %439, %440 : vector<16x128xi1>, vector<16x128xf32>
    %442 = vector.extract_strided_slice %392 {offsets = [0, 1], sizes = [16, 127], strides = [1, 1]} : vector<16x128xf32> to vector<16x127xf32>
    %443 = vector.extract_strided_slice %392 {offsets = [0, 0], sizes = [16, 1], strides = [1, 1]} : vector<16x128xf32> to vector<16x1xf32>
    %444 = tpu.concatenate %442, %443 in 1 : vector<16x127xf32>, vector<16x1xf32> -> vector<16x128xf32>
    %cst_82 = arith.constant 0x7F800000 : f32
    %445 = vector.broadcast %cst_82 : f32 to vector<16x128xf32>
    %446 = arith.select %35, %444, %445 : vector<16x128xi1>, vector<16x128xf32>
    %447 = arith.minimumf %441, %446 : vector<16x128xf32>
    %448 = arith.minimumf %447, %392 : vector<16x128xf32>
    %449 = arith.minimumf %436, %448 : vector<16x128xf32>
    %450 = vector.extract_strided_slice %449 {offsets = [0, 127], sizes = [16, 1], strides = [1, 1]} : vector<16x128xf32> to vector<16x1xf32>
    %451 = vector.extract_strided_slice %449 {offsets = [0, 0], sizes = [16, 127], strides = [1, 1]} : vector<16x128xf32> to vector<16x127xf32>
    %452 = tpu.concatenate %450, %451 in 1 : vector<16x1xf32>, vector<16x127xf32> -> vector<16x128xf32>
    %cst_83 = arith.constant 0xFF800000 : f32
    %453 = vector.broadcast %cst_83 : f32 to vector<16x128xf32>
    %454 = arith.select %33, %452, %453 : vector<16x128xi1>, vector<16x128xf32>
    %455 = vector.extract_strided_slice %449 {offsets = [0, 1], sizes = [16, 127], strides = [1, 1]} : vector<16x128xf32> to vector<16x127xf32>
    %456 = vector.extract_strided_slice %449 {offsets = [0, 0], sizes = [16, 1], strides = [1, 1]} : vector<16x128xf32> to vector<16x1xf32>
    %457 = tpu.concatenate %455, %456 in 1 : vector<16x127xf32>, vector<16x1xf32> -> vector<16x128xf32>
    %cst_84 = arith.constant 0xFF800000 : f32
    %458 = vector.broadcast %cst_84 : f32 to vector<16x128xf32>
    %459 = arith.select %35, %457, %458 : vector<16x128xi1>, vector<16x128xf32>
    %460 = arith.maximumf %454, %459 : vector<16x128xf32>
    %461 = arith.maximumf %460, %449 : vector<16x128xf32>
    %462 = vector.extract_strided_slice %461 {offsets = [15, 0], sizes = [1, 128], strides = [1, 1]} : vector<16x128xf32> to vector<1x128xf32>
    %463 = vector.extract_strided_slice %461 {offsets = [0, 0], sizes = [15, 128], strides = [1, 1]} : vector<16x128xf32> to vector<15x128xf32>
    %464 = tpu.concatenate %462, %463 in 0 : vector<1x128xf32>, vector<15x128xf32> -> vector<16x128xf32>
    %cst_85 = arith.constant 0xFF800000 : f32
    %465 = vector.broadcast %cst_85 : f32 to vector<16x128xf32>
    %466 = arith.select %29, %464, %465 : vector<16x128xi1>, vector<16x128xf32>
    %467 = vector.extract_strided_slice %461 {offsets = [1, 0], sizes = [15, 128], strides = [1, 1]} : vector<16x128xf32> to vector<15x128xf32>
    %468 = vector.extract_strided_slice %461 {offsets = [0, 0], sizes = [1, 128], strides = [1, 1]} : vector<16x128xf32> to vector<1x128xf32>
    %469 = tpu.concatenate %467, %468 in 0 : vector<15x128xf32>, vector<1x128xf32> -> vector<16x128xf32>
    %cst_86 = arith.constant 0xFF800000 : f32
    %470 = vector.broadcast %cst_86 : f32 to vector<16x128xf32>
    %471 = arith.select %31, %469, %470 : vector<16x128xi1>, vector<16x128xf32>
    %472 = arith.maximumf %466, %471 : vector<16x128xf32>
    %473 = arith.maximumf %472, %461 : vector<16x128xf32>
    %474 = arith.subf %392, %473 : vector<16x128xf32>
    %cst_87 = arith.constant 0.000000e+00 : f32
    %475 = vector.broadcast %cst_87 : f32 to vector<16x128xf32>
    %476 = arith.maximumf %474, %475 : vector<16x128xf32>
    %477 = arith.mulf %424, %476 : vector<16x128xf32>
    %478 = arith.subf %476, %477 : vector<16x128xf32>
    %cst_88 = arith.constant 0.000000e+00 : f32
    %479 = vector.broadcast %cst_88 : f32 to vector<16x128xf32>
    %480 = arith.maximumf %478, %479 : vector<16x128xf32>
    %481 = arith.addf %424, %480 : vector<16x128xf32>
    %482 = arith.mulf %258, %0 : vector<16x128xf32>
    %483 = vector.shape_cast %482 : vector<16x128xf32> to vector<1x16x128xf32>
    %cst_89 = arith.constant dense<0.000000e+00> : vector<1xf32>
    %484 = vector.multi_reduction <add>, %483, %cst_89 [1, 2] : vector<1x16x128xf32> to vector<1xf32>
    %485 = vector.shape_cast %484 : vector<1xf32> to vector<1x1x1xf32>
    %486 = vector.extract %485[0, 0, 0] : f32 from vector<1x1x1xf32>
    %487 = vector.broadcast %486 : f32 to vector<1x1xf32>
    %488 = vector.shape_cast %258 : vector<16x128xf32> to vector<1x16x128xf32>
    %cst_90 = arith.constant dense<0.000000e+00> : vector<1xf32>
    %489 = vector.multi_reduction <add>, %488, %cst_90 [1, 2] : vector<1x16x128xf32> to vector<1xf32>
    %490 = vector.shape_cast %489 : vector<1xf32> to vector<1x1x1xf32>
    %491 = vector.extract %490[0, 0, 0] : f32 from vector<1x1x1xf32>
    %492 = vector.broadcast %491 : f32 to vector<1x1xf32>
    %493 = arith.mulf %481, %23 : vector<16x128xf32>
    %494 = vector.shape_cast %493 : vector<16x128xf32> to vector<1x16x128xf32>
    %cst_91 = arith.constant dense<0.000000e+00> : vector<1xf32>
    %495 = vector.multi_reduction <add>, %494, %cst_91 [1, 2] : vector<1x16x128xf32> to vector<1xf32>
    %496 = vector.shape_cast %495 : vector<1xf32> to vector<1x1x1xf32>
    %497 = vector.extract %496[0, 0, 0] : f32 from vector<1x1x1xf32>
    %498 = vector.broadcast %497 : f32 to vector<1x1xf32>
    %499 = vector.shape_cast %481 : vector<16x128xf32> to vector<1x16x128xf32>
    %cst_92 = arith.constant dense<0.000000e+00> : vector<1xf32>
    %500 = vector.multi_reduction <add>, %499, %cst_92 [1, 2] : vector<1x16x128xf32> to vector<1xf32>
    %501 = vector.shape_cast %500 : vector<1xf32> to vector<1x1x1xf32>
    %502 = vector.extract %501[0, 0, 0] : f32 from vector<1x1x1xf32>
    %503 = vector.broadcast %502 : f32 to vector<1x1xf32>
    %504 = tpu.iota {dimensions = array<i32: 0>} : vector<8x128xi32>
    %c0_i32 = arith.constant 0 : i32
    %505 = vector.broadcast %c0_i32 : i32 to vector<8x128xi32>
    %506 = arith.cmpi eq, %504, %505 : vector<8x128xi32>
    %c1_i32_93 = arith.constant 1 : i32
    %507 = vector.broadcast %c1_i32_93 : i32 to vector<8x128xi32>
    %508 = arith.cmpi eq, %504, %507 : vector<8x128xi32>
    %c2_i32 = arith.constant 2 : i32
    %509 = vector.broadcast %c2_i32 : i32 to vector<8x128xi32>
    %510 = arith.cmpi eq, %504, %509 : vector<8x128xi32>
    %c3_i32 = arith.constant 3 : i32
    %511 = vector.broadcast %c3_i32 : i32 to vector<8x128xi32>
    %512 = arith.cmpi eq, %504, %511 : vector<8x128xi32>
    %cst_94 = arith.constant 0.000000e+00 : f32
    %513 = vector.shape_cast %503 : vector<1x1xf32> to vector<1x1xf32>
    %514 = vector.broadcast %513 : vector<1x1xf32> to vector<8x128xf32>
    %515 = vector.broadcast %cst_94 : f32 to vector<8x128xf32>
    %516 = arith.select %512, %514, %515 : vector<8x128xi1>, vector<8x128xf32>
    %517 = vector.shape_cast %498 : vector<1x1xf32> to vector<1x1xf32>
    %518 = vector.broadcast %517 : vector<1x1xf32> to vector<8x128xf32>
    %519 = arith.select %510, %518, %516 : vector<8x128xi1>, vector<8x128xf32>
    %520 = vector.shape_cast %492 : vector<1x1xf32> to vector<1x1xf32>
    %521 = vector.broadcast %520 : vector<1x1xf32> to vector<8x128xf32>
    %522 = arith.select %508, %521, %519 : vector<8x128xi1>, vector<8x128xf32>
    %523 = vector.shape_cast %487 : vector<1x1xf32> to vector<1x1xf32>
    %524 = vector.broadcast %523 : vector<1x1xf32> to vector<8x128xf32>
    %525 = arith.select %506, %524, %522 : vector<8x128xi1>, vector<8x128xf32>
    %c0_95 = arith.constant 0 : index
    %c0_96 = arith.constant 0 : index
    %526 = vector.load %arg3[%c0_95, %c0_96] : memref<8x128xf32, #tpu.memory_space<vmem>>, vector<8x128xf32>
    tpu.vector_store %arg3[%c0_95, %c0_96], %525 {strides = array<i32>} : memref<8x128xf32, #tpu.memory_space<vmem>>, vector<8x128xf32>,
    return
  }
  func.func @transform_0(%arg0: i32) -> (i32, i32, i32) {
    %c0_i32 = arith.constant 0 : i32
    %c0_i32_0 = arith.constant 0 : i32
    %c0_i32_1 = arith.constant 0 : i32
    return %c0_i32, %c0_i32_0, %arg0 : i32, i32, i32
  }
  func.func @transform_1(%arg0: i32) -> (i32, i32) {
    %c0_i32 = arith.constant 0 : i32
    %c0_i32_0 = arith.constant 0 : i32
    return %c0_i32, %arg0 : i32, i32
  }
  func.func @transform_2(%arg0: i32) -> (i32, i32) {
    %c0_i32 = arith.constant 0 : i32
    %c0_i32_0 = arith.constant 0 : i32
    return %c0_i32, %arg0 : i32, i32
  }
}

</mosaic_0001>

<bundles_post_ra>
// kernel: tpu_custom_call.1
= control target key start
LH: loop header
LB: loop body
LE: loop exit
PB: predicated region body
PF: predicated region fallthrough
CT: control target
= control target key end

     0   :  { %8 = vsyncpa [#allocation3], 0  ;;  %s191_s0 = inlined_call_operand.hbm [shape: f32[8,128], index: 0, kind: input, shape index: {}]   ;;  %s192_s1 = inlined_call_operand.hbm [shape: f32[8,128], index: 1, kind: output, shape index: {0}]   ;;  %s193_s2 = inlined_call_operand.hbm [shape: f32[8,128], index: 2, kind: output, shape index: {1}]  }
   0x1   :  { %9 = vsyncpa [#allocation4], 0 }
   0x2   :  { %10 = vsyncpa [#allocation7], 0  ;;  %s136_s9 = smov [#allocation2]   ;;  %s64_s13 = scalar_lea.hbm %s191_s0, 128 }
   0x3   :  { %s17_s10 = sshll.u32 %s136_s9, 4  ;;  %p65_p0 = scmp.ne.s32.totalorder %s191_s0, %s64_s13  ;;  %s18_s10 = int_to_ptr.vmem [resolvable:$true] %s17_s10 }
   0x4   :  { %p68_p1 = scmp.lt.u32.totalorder %s64_s13, %s191_s0 }
   0x6   :  { %p70_p2 = pnand %p68_p1, %p65_p0 }
   0x8   :  { %73 = shalt.err (!%p70_p2)
}
   0x9   :  { %s74_s18 = scalar_lea.vmem %s18_s10, 128  ;;  %p79_p4 = scmp.lt.s32.totalorder %s18_s10, %s18_s10 }
   0xa   :  { %p75_p3 = scmp.ne.s32.totalorder %s18_s10, %s74_s18  ;;  %p80_p5 = scmp.lt.s32.totalorder %s74_s18, %s74_s18 }
   0xc   :  { %p81_p6 = por %p80_p5, %p79_p4 }
   0xe   :  { %p82_p7 = pnand %p81_p6, %p75_p3 }
  0x10   :  { %85 = shalt.err (!%p82_p7)
}
  0x11   :  { %20 = dma.hbm_to_vmem [thread:$0]  %s191_s0, 128, %s18_s10, [#allocation3]  }
  0x12   :  { %130 = dma.done.wait [#allocation3], 128  }
  0x13   :  { %131 = vsyncadd [#allocation3], 4294967168  ;;  %s137_s21 = smov [#allocation6]   ;;  %v24_v0 = vld [vmem:[#allocation2] sm:$0xff]  ;;  %s138_s23 = smov 1  }
  0x14   :  { %s47_s22 = sshll.u32 %s137_s21, 4  ;;  %25 = vrot.lane.b32.xlu0 %v24_v0, %s138_s23  ;;  %v29_v1 = vrot.slane %v24_v0, 7  ;;  %s48_s22 = int_to_ptr.vmem [resolvable:$true] %s47_s22 }
  0x15   :  { %s86_s24 = scalar_lea.vmem %s48_s22, 128  ;;  %p91_p9 = scmp.lt.s32.totalorder %s48_s22, %s48_s22 }
  0x16   :  { %30 = vst [vmem:[#allocation6] sm:$0xff] %v29_v1  ;;  %p87_p8 = scmp.ne.s32.totalorder %s48_s22, %s86_s24  ;;  %p92_p10 = scmp.lt.s32.totalorder %s86_s24, %s86_s24 }
  0x18   :  { %p93_p11 = por %p92_p10, %p91_p9 }
  0x1a   :  { %p94_p12 = pnand %p93_p11, %p87_p8 }
  0x1c   :  { %97 = shalt.err (!%p94_p12)
}
  0x1d   :  { %s98_s0 = scalar_lea.hbm %s193_s2, 128 }
  0x1e   :  { %p99_p13 = scmp.ne.s32.totalorder %s193_s2, %s98_s0  ;;  %p102_p0 = scmp.lt.u32.totalorder %s98_s0, %s193_s2 }
  0x20   :  { %p104_p1 = pnand %p102_p0, %p99_p13 }
  0x22   :  { %107 = shalt.err (!%p104_p1)
}
  0x23   :  { %50 = dma.vmem_to_hbm [thread:$0]  %s48_s22, 128, %s193_s2, [#allocation7]  }
  0x24   :  { %s139_s5 = smov [#allocation5]  }
  0x25   :  { %s37_s6 = sshll.u32 %s139_s5, 4  ;;  %s38_s6 = int_to_ptr.vmem [resolvable:$true] %s37_s6 }
  0x26   :  { %s108_s7 = scalar_lea.vmem %s38_s6, 128  ;;  %p113_p3 = scmp.lt.s32.totalorder %s38_s6, %s38_s6 }
  0x27   :  { %p109_p2 = scmp.ne.s32.totalorder %s38_s6, %s108_s7  ;;  %p114_p4 = scmp.lt.s32.totalorder %s108_s7, %s108_s7 }
  0x29   :  { %p115_p5 = por %p114_p4, %p113_p3 }
  0x2b   :  { %p116_p6 = pnand %p115_p5, %p109_p2 }
  0x86   :  { %v26_v2 = vpop.permute.xlu0 %25 }
  0x87   :  { %27 = vst [vmem:[#allocation5] sm:$0xff] %v26_v2 }
  0x88   :  { %119 = shalt.err (!%p116_p6)
}
  0x89   :  { %s120_s10 = scalar_lea.hbm %s192_s1, 128 }
  0x8a   :  { %p121_p7 = scmp.ne.s32.totalorder %s192_s1, %s120_s10  ;;  %p124_p8 = scmp.lt.u32.totalorder %s120_s10, %s192_s1 }
  0x8c   :  { %p126_p9 = pnand %p124_p8, %p121_p7 }
  0x8e   :  { %129 = shalt.err (!%p126_p9)
}
  0x8f   :  { %40 = dma.vmem_to_hbm [thread:$0]  %s38_s6, 128, %s192_s1, [#allocation4]  }
  0x90   :  { %132 = dma.done.wait [#allocation4], 128  }
  0x91   :  { %133 = vsyncadd [#allocation4], 4294967168 }
  0x92   :  { %134 = dma.done.wait [#allocation7], 128  }
  0x93   :  { %135 = vsyncadd [#allocation7], 4294967168 }
  0x94   :  { %57 = vsyncpa [#allocation3], 1 }
  0x95   :  { %58 = vsyncpa [#allocation4], 1 }
  0x96   :  { %59 = vsyncpa [#allocation7], 1 }

// kernel: cl_dice_loss.1
= control target key start
LH: loop header
LB: loop body
LE: loop exit
PB: predicated region body
PF: predicated region fallthrough
CT: control target
= control target key end

     0   :  { %s909_s15 = smov 1   ;;  %v64_v50 = vlaneseq  ;;  %vm80_vm0 = vcmask 1040384   ;;  %vm88_vm1 = vcmask 1046528   ;;  %s1520_s1 = inlined_call_operand.vmem [shape: f32[16,128], index: 1, kind: input, shape index: {}]   ;;  %s1521_s0 = inlined_call_operand.vmem [shape: f32[4,16,128], index: 0, kind: input, shape index: {}]   ;;  %s1522_s2 = inlined_call_operand.vmem [shape: f32[8,128], index: 2, kind: output, shape index: {}]  }
   0x1   :  { %v929_v0 = vld [vmem:[%s1520_s1 + $0x8] sm:$0xff]  ;;  %v934_v1 = vld [vmem:[%s1520_s1] sm:$0xff]  ;;  %v871_v3 = vld [vmem:[%s1521_s0 + $0x10] sm:$0xff] }
   0x2   :  { %v13_v2 = vld [vmem:[%s1521_s0] sm:$0xff]  ;;  %470 = vrot.lane.b32.xlu1 %v929_v0, %s909_s15  ;;  %468 = vrot.lane.b32.xlu0 %v934_v1, %s909_s15  ;;  %v14_v6 = vld [vmem:[%s1521_s0 + $0x8] sm:$0xff]  ;;  %v980_v51 = vshrl.u32 %v64_v50, 7  ;;  %v445_v54 = vrot.slane %v929_v0, 7  ;;  %v448_v55 = vrot.slane %v934_v1, 7  ;;  %v455_v56 = vrot.slane %v934_v1, 1 }
   0x3   :  { %v873_v4 = vld [vmem:[%s1521_s0 + $0x20] sm:$0xff]  ;;  %v24_v5 = vmax.f32 %v13_v2, %v871_v3  ;;  %v872_v7 = vld [vmem:[%s1521_s0 + $0x18] sm:$0xff]  ;;  %v875_v8 = vld [vmem:[%s1521_s0 + $0x30] sm:$0xff]  ;;  %v456_v57 = vrot.slane %v929_v0, 1  ;;  %v68_v59 = vand.u32 127, %v64_v50 }
   0x4   :  { %v874_v9 = vld [vmem:[%s1521_s0 + $0x28] sm:$0xff]  ;;  %v25_v10 = vmax.f32 %v14_v6, %v872_v7  ;;  %v876_v12 = vld [vmem:[%s1521_s0 + $0x38] sm:$0xff]  ;;  %s910_s0 = smov 127   ;;  %v987_v58 = vadd.s32 8, %v980_v51  ;;  %v452_v63 = vsel %vm80_vm0, %v445_v54, %v448_v55  ;;  %vm70_vm2 = vcmp.ge.s32.totalorder %v980_v51, 1 }
   0x5   :  { %v26_v11 = vmax.f32 %v24_v5, %v873_v4  ;;  %v461_v62 = vsel %vm88_vm1, %v456_v57, %v455_v56  ;;  %vm857_vm6 = vcmp.eq.s32.totalorder %v980_v51, 3  ;;  %vm856_vm7 = vcmp.eq.s32.totalorder %v980_v51, 2 }
   0x6   :  { %v27_v13 = vmax.f32 %v25_v10, %v874_v9  ;;  %vm73_vm3 = vcmp.le.s32.totalorder %v987_v58, 14  ;;  %v69_v10 = vand.u32 15, %v68_v59  ;;  %vm855_vm8 = vcmp.eq.s32.totalorder %v980_v51, 1 }
   0x7   :  { %v28_v14 = vmax.f32 %v26_v11, %v875_v8  ;;  %vm854_vm9 = vcmp.eq.s32.totalorder %v980_v51, 0 }
   0x8   :  { %v29_v15 = vmax.f32 %v27_v13, %v876_v12  ;;  %vm1005_vm4 = vcmp.le.s32.totalorder %v69_v10, 14  ;;  %vm1015_vm5 = vcmp.ge.s32.totalorder %v69_v10, 1 }
   0x9   :  { %v30_v16 = vsub.f32 %v13_v2, %v28_v14  ;;  %v36_v17 = vsub.f32 %v871_v3, %v28_v14  ;;  %v42_v18 = vsub.f32 %v873_v4, %v28_v14  ;;  %v48_v19 = vsub.f32 %v875_v8, %v28_v14 }
   0xa   :  { %v31_v20 = vsub.f32 %v14_v6, %v29_v15  ;;  %v37_v21 = vsub.f32 %v872_v7, %v29_v15  ;;  %v43_v25 = vsub.f32 %v874_v9, %v29_v15  ;;  %v49_v27 = vsub.f32 %v876_v12, %v29_v15 }
   0xb   :  { %v32_v22 = vmul.f32 1.442695, %v30_v16  ;;  %v38_v23 = vmul.f32 1.442695, %v36_v17  ;;  %v44_v24 = vmul.f32 1.442695, %v42_v18  ;;  %v449_v6 = vsel %vm80_vm0, %v448_v55, %v445_v54 }
   0xc   :  { %v50_v26 = vmul.f32 1.442695, %v48_v19  ;;  %v34_v28 = vmul.f32 1.442695, %v31_v20  ;;  %v40_v29 = vmul.f32 1.442695, %v37_v21  ;;  %v457_v9 = vsel %vm88_vm1, %v455_v56, %v456_v57 }
   0xd   :  { %887 = vpow2.f32 %v32_v22  ;;  %v46_v30 = vmul.f32 1.442695, %v43_v25  ;;  %v52_v31 = vmul.f32 1.442695, %v49_v27  ;;  %v463_v7 = vsel %vm73_vm3, %v461_v62, inf }
   0xe   :  { %889 = vpow2.f32 %v38_v23  ;;  %v453_v8 = vsel %vm70_vm2, %v452_v63, inf  ;;  %v465_v16 = vmin.f32 %v449_v6, %v463_v7 }
   0xf   :  { %891 = vpow2.f32 %v44_v24  ;;  %v464_v17 = vmin.f32 %v453_v8, %v457_v9 }
  0x10   :  { %893 = vpow2.f32 %v50_v26 }
  0x11   :  { %895 = vpow2.f32 %v34_v28 }
  0x12   :  { %897 = vpow2.f32 %v40_v29  ;;  %v467_v29 = vmin.f32 %v465_v16, %v929_v0 }
  0x13   :  { %899 = vpow2.f32 %v46_v30 }
  0x14   :  { %901 = vpow2.f32 %v52_v31  ;;  %v466_v31 = vmin.f32 %v464_v17, %v934_v1 }
  0x17   :  { %v888_v32 = vpop.eup %887 }
  0x18   :  { %v890_v33 = vpop.eup %889 }
  0x19   :  { %v892_v34 = vpop.eup %891  ;;  %v54_v35 = vadd.f32 %v890_v33, %v888_v32 }
  0x1a   :  { %v894_v36 = vpop.eup %893 }
  0x1b   :  { %v896_v37 = vpop.eup %895  ;;  %v56_v38 = vadd.f32 %v892_v34, %v54_v35 }
  0x1c   :  { %v898_v39 = vpop.eup %897 }
  0x1d   :  { %v900_v40 = vpop.eup %899  ;;  %v58_v41 = vadd.f32 %v894_v36, %v56_v38  ;;  %v55_v42 = vadd.f32 %v898_v39, %v896_v37 }
  0x1e   :  { %v902_v43 = vpop.eup %901 }
  0x1f   :  { %903 = vrcp.f32 %v58_v41  ;;  %v57_v44 = vadd.f32 %v900_v40, %v55_v42 }
  0x21   :  { %v59_v45 = vadd.f32 %v902_v43, %v57_v44 }
  0x23   :  { %905 = vrcp.f32 %v59_v45 }
  0x29   :  { %v904_v46 = vpop.eup %903 }
  0x2a   :  { %v964_v47 = vmul.f32 %v904_v46, %v890_v33 }
  0x2c   :  { %110 = vrot.lane.b32.xlu1 %v964_v47, %s910_s0  ;;  %102 = vrot.lane.b32.xlu0 %v964_v47, %s909_s15  ;;  %v81_v61 = vrot.slane %v964_v47, 7  ;;  %v89_v5 = vrot.slane %v964_v47, 1 }
  0x2d   :  { %v906_v48 = vpop.eup %905 }
  0x2e   :  { %v970_v49 = vmul.f32 %v906_v48, %v898_v39 }
  0x30   :  { %112 = vrot.lane.b32.xlu1 %v970_v49, %s910_s0  ;;  %104 = vrot.lane.b32.xlu0 %v970_v49, %s909_s15  ;;  %v77_v60 = vrot.slane %v970_v49, 7  ;;  %v90_v3 = vrot.slane %v970_v49, 1 }
  0x32   :  { %v85_v11 = vsel %vm80_vm0, %v77_v60, %v81_v61  ;;  %v95_v12 = vsel %vm88_vm1, %v90_v3, %v89_v5  ;;  %v91_v19 = vsel %vm88_vm1, %v89_v5, %v90_v3  ;;  %v82_v20 = vsel %vm80_vm0, %v81_v61, %v77_v60 }
  0x33   :  { %v86_v18 = vsel %vm70_vm2, %v85_v11, inf  ;;  %v97_v21 = vsel %vm73_vm3, %v95_v12, inf }
  0x34   :  { %478 = vrot.lane.b32.xlu1 %v929_v0, %s910_s0  ;;  %476 = vrot.lane.b32.xlu0 %v934_v1, %s910_s0  ;;  %v98_v27 = vmin.f32 %v86_v18, %v91_v19  ;;  %v99_v28 = vmin.f32 %v82_v20, %v97_v21 }
  0x36   :  { %v100_v43 = vmin.f32 %v98_v27, %v964_v47  ;;  %v101_v44 = vmin.f32 %v99_v28, %v970_v49 }
  0x74   :  { %v471_v52 = vpop.permute.xlu1 %470  ;;  %v469_v53 = vpop.permute.xlu0 %468 }
  0x75   :  { %v475_v33 = vsel %vm1015_vm5, %v471_v52, inf  ;;  %v474_v34 = vsel %vm1015_vm5, %v469_v53, inf }
  0x9e   :  { %v111_v2 = vpop.permute.xlu1 %110  ;;  %v103_v4 = vpop.permute.xlu0 %102 }
  0x9f   :  { %v116_v23 = vsel %vm1005_vm4, %v111_v2, inf  ;;  %v108_v24 = vsel %vm1015_vm5, %v103_v4, inf }
  0xa0   :  { %v118_v37 = vmin.f32 %v108_v24, %v116_v23 }
  0xa2   :  { %v113_v14 = vpop.permute.xlu1 %112  ;;  %v105_v15 = vpop.permute.xlu0 %104  ;;  %v120_v45 = vmin.f32 %v118_v37, %v964_v47 }
  0xa3   :  { %v117_v25 = vsel %vm1005_vm4, %v113_v14, inf  ;;  %v109_v26 = vsel %vm1015_vm5, %v105_v15, inf }
  0xa4   :  { %v119_v38 = vmin.f32 %v109_v26, %v117_v25  ;;  %v1051_v52 = vmin.f32 %v100_v43, %v120_v45 }
  0xa6   :  { %v479_v30 = vpop.permute.xlu1 %478  ;;  %v477_v32 = vpop.permute.xlu0 %476  ;;  %v121_v46 = vmin.f32 %v119_v38, %v970_v49  ;;  %v176_v2 = vrot.slane %v1051_v52, 7  ;;  %v183_v3 = vrot.slane %v1051_v52, 1 }
  0xa7   :  { %v483_v35 = vsel %vm1005_vm4, %v479_v30, inf  ;;  %v482_v36 = vsel %vm1005_vm4, %v477_v32, inf }
  0xa8   :  { %v485_v39 = vmin.f32 %v475_v33, %v483_v35  ;;  %v484_v40 = vmin.f32 %v474_v34, %v482_v36  ;;  %v1053_v53 = vmin.f32 %v101_v44, %v121_v46 }
  0xaa   :  { %v487_v41 = vmin.f32 %v485_v39, %v929_v0  ;;  %v486_v42 = vmin.f32 %v484_v40, %v934_v1  ;;  %v174_v59 = vrot.slane %v1053_v53, 7  ;;  %v184_v60 = vrot.slane %v1053_v53, 1 }
  0xac   :  { %v1043_v48 = vmin.f32 %v467_v29, %v487_v41  ;;  %v1045_v50 = vmin.f32 %v466_v31, %v486_v42  ;;  %v180_v7 = vsel %vm80_vm0, %v174_v59, %v176_v2  ;;  %v189_v8 = vsel %vm88_vm1, %v184_v60, %v183_v3 }
  0xad   :  { %v181_v15 = vsel %vm70_vm2, %v180_v7, inf  ;;  %v185_v16 = vsel %vm88_vm1, %v183_v3, %v184_v60  ;;  %v1089_v17 = vsel %vm80_vm0, %v176_v2, %v174_v59  ;;  %v1093_v18 = vsel %vm73_vm3, %v189_v8, inf }
  0xae   :  { %494 = vrot.lane.b32.xlu1 %v1043_v48, %s909_s15  ;;  %492 = vrot.lane.b32.xlu0 %v1045_v50, %s909_s15  ;;  %v540_v54 = vrot.slane %v1043_v48, 7  ;;  %v542_v55 = vrot.slane %v1045_v50, 7  ;;  %v549_v56 = vrot.slane %v1045_v50, 1  ;;  %v550_v57 = vrot.slane %v1043_v48, 1 }
  0xaf   :  { %v192_v21 = vmin.f32 %v181_v15, %v185_v16  ;;  %v193_v24 = vmin.f32 %v1089_v17, %v1093_v18 }
  0xb0   :  { %v546_v61 = vsel %vm80_vm0, %v540_v54, %v542_v55  ;;  %v555_v4 = vsel %vm88_vm1, %v550_v57, %v549_v56  ;;  %v551_v6 = vsel %vm88_vm1, %v549_v56, %v550_v57  ;;  %v543_v9 = vsel %vm80_vm0, %v542_v55, %v540_v54 }
  0xb1   :  { %v547_v5 = vsel %vm70_vm2, %v546_v61, inf  ;;  %v557_v10 = vsel %vm73_vm3, %v555_v4, inf }
  0xb2   :  { %126 = vrot.lane.b32.xlu0 %v1051_v52, %s909_s15  ;;  %128 = vrot.lane.b32.xlu1 %v1053_v53, %s909_s15  ;;  %v558_v14 = vmin.f32 %v547_v5, %v551_v6  ;;  %v559_v19 = vmin.f32 %v543_v9, %v557_v10 }
  0xb4   :  { %v560_v25 = vmin.f32 %v558_v14, %v1045_v50  ;;  %v561_v33 = vmin.f32 %v559_v19, %v1043_v48 }
  0xb6   :  { %134 = vrot.lane.b32.xlu0 %v1051_v52, %s910_s0  ;;  %136 = vrot.lane.b32.xlu1 %v1053_v53, %s910_s0 }
  0xba   :  { %500 = vrot.lane.b32.xlu0 %v1045_v50, %s910_s0  ;;  %502 = vrot.lane.b32.xlu1 %v1043_v48, %s910_s0 }
 0x120   :  { %v495_v62 = vpop.permute.xlu1 %494  ;;  %v493_v63 = vpop.permute.xlu0 %492 }
 0x121   :  { %v499_v30 = vsel %vm1015_vm5, %v495_v62, -inf  ;;  %v563_v34 = vsel %vm1015_vm5, %v495_v62, inf  ;;  %v498_v35 = vsel %vm1015_vm5, %v493_v63, -inf  ;;  %v562_v36 = vsel %vm1015_vm5, %v493_v63, inf }
 0x124   :  { %v127_v11 = vpop.permute.xlu0 %126  ;;  %v129_v12 = vpop.permute.xlu1 %128 }
 0x125   :  { %v132_v26 = vsel %vm1015_vm5, %v127_v11, -inf  ;;  %v133_v27 = vsel %vm1015_vm5, %v129_v12, -inf  ;;  %v196_v37 = vsel %vm1015_vm5, %v127_v11, inf  ;;  %v197_v38 = vsel %vm1015_vm5, %v129_v12, inf }
 0x128   :  { %v135_v20 = vpop.permute.xlu0 %134  ;;  %v137_v23 = vpop.permute.xlu1 %136 }
 0x129   :  { %v140_v28 = vsel %vm1005_vm4, %v135_v20, -inf  ;;  %v141_v29 = vsel %vm1005_vm4, %v137_v23, -inf  ;;  %v198_v40 = vsel %vm1005_vm4, %v135_v20, inf  ;;  %v199_v59 = vsel %vm1005_vm4, %v137_v23, inf }
 0x12a   :  { %v142_v31 = vmax.f32 %v132_v26, %v140_v28  ;;  %v143_v32 = vmax.f32 %v133_v27, %v141_v29  ;;  %v200_v60 = vmin.f32 %v196_v37, %v198_v40  ;;  %v201_v8 = vmin.f32 %v197_v38, %v199_v59 }
 0x12b   :  { %v194_v27 = vmin.f32 %v192_v21, %v1051_v52 }
 0x12c   :  { %v144_v39 = vmax.f32 %v142_v31, %v1051_v52  ;;  %v145_v41 = vmax.f32 %v143_v32, %v1053_v53  ;;  %v501_v42 = vpop.permute.xlu0 %500  ;;  %v503_v43 = vpop.permute.xlu1 %502  ;;  %v202_v15 = vmin.f32 %v200_v60, %v1051_v52  ;;  %v203_v29 = vmin.f32 %v201_v8, %v1053_v53 }
 0x12d   :  { %v506_v44 = vsel %vm1005_vm4, %v501_v42, -inf  ;;  %v564_v45 = vsel %vm1005_vm4, %v501_v42, inf  ;;  %v507_v46 = vsel %vm1005_vm4, %v503_v43, -inf  ;;  %v565_v54 = vsel %vm1005_vm4, %v503_v43, inf }
 0x12e   :  { %v150_v55 = vrot.slane %v144_v39, 7  ;;  %v157_v56 = vrot.slane %v144_v39, 1  ;;  %v147_v57 = vrot.slane %v145_v41, 7  ;;  %v158_v61 = vrot.slane %v145_v41, 1 }
 0x12f   :  { %v508_v62 = vmax.f32 %v498_v35, %v506_v44  ;;  %v566_v63 = vmin.f32 %v562_v36, %v564_v45  ;;  %v509_v4 = vmax.f32 %v499_v30, %v507_v46  ;;  %v567_v5 = vmin.f32 %v563_v34, %v565_v54 }
 0x130   :  { %v151_v2 = vsel %vm80_vm0, %v150_v55, %v147_v57  ;;  %v154_v3 = vsel %vm80_vm0, %v147_v57, %v150_v55  ;;  %v159_v6 = vsel %vm88_vm1, %v157_v56, %v158_v61  ;;  %v163_v7 = vsel %vm88_vm1, %v158_v61, %v157_v56 }
 0x131   :  { %v510_v9 = vmax.f32 %v508_v62, %v1045_v50  ;;  %v165_v10 = vsel %vm73_vm3, %v163_v7, -inf  ;;  %v568_v11 = vmin.f32 %v566_v63, %v1045_v50  ;;  %v511_v12 = vmax.f32 %v509_v4, %v1043_v48 }
 0x132   :  { %v569_v14 = vmin.f32 %v567_v5, %v1043_v48  ;;  %v167_v16 = vmax.f32 %v151_v2, %v165_v10  ;;  %v1165_v35 = vmin.f32 %v194_v27, %v202_v15  ;;  %v155_v40 = vsel %vm70_vm2, %v154_v3, -inf }
 0x133   :  { %v516_v17 = vrot.slane %v510_v9, 7  ;;  %v523_v18 = vrot.slane %v510_v9, 1  ;;  %v1144_v19 = vmin.f32 %v560_v25, %v568_v11  ;;  %v513_v20 = vrot.slane %v511_v12, 7 }
 0x134   :  { %v524_v23 = vrot.slane %v511_v12, 1  ;;  %v1146_v26 = vmin.f32 %v561_v33, %v569_v14  ;;  %v1149_v28 = vmax.f32 %v167_v16, %v145_v41  ;;  %v195_v25 = vmin.f32 %v193_v24, %v1053_v53 }
 0x135   :  { %v517_v30 = vsel %vm80_vm0, %v516_v17, %v513_v20  ;;  %v520_v31 = vsel %vm80_vm0, %v513_v20, %v516_v17  ;;  %574 = vrot.lane.b32.xlu0 %v1144_v19, %s909_s15  ;;  %v166_v24 = vmax.f32 %v155_v40, %v159_v6  ;;  %v632_v45 = vrot.slane %v1144_v19, 7 }
 0x136   :  { %v525_v32 = vsel %vm88_vm1, %v523_v18, %v524_v23  ;;  %v529_v34 = vsel %vm88_vm1, %v524_v23, %v523_v18  ;;  %v521_v21 = vsel %vm70_vm2, %v520_v31, -inf  ;;  %576 = vrot.lane.b32.xlu1 %v1146_v26, %s909_s15  ;;  %v1167_v38 = vmin.f32 %v195_v25, %v203_v29 }
 0x137   :  { %v531_v33 = vsel %vm73_vm3, %v529_v34, -inf  ;;  %v532_v36 = vmax.f32 %v521_v21, %v525_v32  ;;  %v1183_v43 = vmax.f32 %v166_v24, %v144_v39  ;;  %v630_v44 = vrot.slane %v1146_v26, 7 }
 0x138   :  { %v533_v37 = vmax.f32 %v517_v30, %v531_v33  ;;  %v264_v46 = vrot.slane %v1167_v38, 7  ;;  %v266_v54 = vrot.slane %v1165_v35, 7  ;;  %v639_v56 = vrot.slane %v1144_v19, 1 }
 0x139   :  { %208 = vrot.lane.b32.xlu0 %v1165_v35, %s909_s15  ;;  %v1179_v42 = vmax.f32 %v532_v36, %v510_v9  ;;  %v640_v39 = vrot.slane %v1146_v26, 1  ;;  %v636_v59 = vsel %vm80_vm0, %v630_v44, %v632_v45  ;;  %v273_v60 = vrot.slane %v1165_v35, 1 }
 0x13a   :  { %v1171_v41 = vmax.f32 %v533_v37, %v511_v12  ;;  %210 = vrot.lane.b32.xlu1 %v1167_v38, %s909_s15  ;;  %v274_v61 = vrot.slane %v1167_v38, 1  ;;  %v270_v62 = vsel %vm80_vm0, %v264_v46, %v266_v54  ;;  %v637_v2 = vsel %vm70_vm2, %v636_v59, inf }
 0x13b   :  { %v641_v3 = vsel %vm88_vm1, %v639_v56, %v640_v39  ;;  %v645_v5 = vsel %vm88_vm1, %v640_v39, %v639_v56  ;;  %v1207_v6 = vsel %vm70_vm2, %v270_v62, inf  ;;  %v633_v11 = vsel %vm80_vm0, %v632_v45, %v630_v44 }
 0x13c   :  { %v1210_v7 = vsel %vm88_vm1, %v273_v60, %v274_v61  ;;  %v279_v8 = vsel %vm88_vm1, %v274_v61, %v273_v60  ;;  %v648_v9 = vmin.f32 %v637_v2, %v641_v3  ;;  %v647_v12 = vsel %vm73_vm3, %v645_v5, inf }
 0x13d   :  { %216 = vrot.lane.b32.xlu0 %v1165_v35, %s910_s0  ;;  %v282_v16 = vmin.f32 %v1207_v6, %v1210_v7  ;;  %v1223_v18 = vsel %vm80_vm0, %v266_v54, %v264_v46  ;;  %v1231_v29 = vsel %vm73_vm3, %v279_v8, inf  ;;  %v649_v34 = vmin.f32 %v633_v11, %v647_v12 }
 0x13e   :  { %218 = vrot.lane.b32.xlu1 %v1167_v38, %s910_s0  ;;  %v650_v32 = vmin.f32 %v648_v9, %v1144_v19 }
 0x141   :  { %582 = vrot.lane.b32.xlu0 %v1144_v19, %s910_s0 }
 0x142   :  { %584 = vrot.lane.b32.xlu1 %v1146_v26, %s910_s0 }
 0x1a7   :  { %v575_v55 = vpop.permute.xlu0 %574 }
 0x1a8   :  { %v1195_v57 = vpop.permute.xlu1 %576  ;;  %v580_v30 = vsel %vm1015_vm5, %v575_v55, -inf  ;;  %v652_v25 = vsel %vm1015_vm5, %v575_v55, inf }
 0x1a9   :  { %v581_v21 = vsel %vm1015_vm5, %v1195_v57, -inf  ;;  %v653_v9 = vsel %vm1015_vm5, %v1195_v57, inf }
 0x1ab   :  { %v209_v63 = vpop.permute.xlu0 %208 }
 0x1ac   :  { %v211_v4 = vpop.permute.xlu1 %210  ;;  %v214_v14 = vsel %vm1015_vm5, %v209_v63, -inf  ;;  %v286_v33 = vsel %vm1015_vm5, %v209_v63, inf }
 0x1ad   :  { %v215_v20 = vsel %vm1015_vm5, %v211_v4, -inf  ;;  %v287_v54 = vsel %vm1015_vm5, %v211_v4, inf }
 0x1af   :  { %v217_v10 = vpop.permute.xlu0 %216 }
 0x1b0   :  { %v222_v15 = vsel %vm1005_vm4, %v217_v10, -inf  ;;  %v219_v17 = vpop.permute.xlu1 %218  ;;  %v288_v40 = vsel %vm1005_vm4, %v217_v10, inf }
 0x1b1   :  { %v224_v23 = vmax.f32 %v214_v14, %v222_v15  ;;  %v223_v27 = vsel %vm1005_vm4, %v219_v17, -inf  ;;  %v289_v61 = vsel %vm1005_vm4, %v219_v17, inf  ;;  %v290_v63 = vmin.f32 %v286_v33, %v288_v40 }
 0x1b2   :  { %v225_v31 = vmax.f32 %v215_v20, %v223_v27  ;;  %v291_v12 = vmin.f32 %v287_v54, %v289_v61  ;;  %v283_v40 = vmin.f32 %v1223_v18, %v1231_v29  ;;  %v171_v18 = vsub.f32 %v970_v49, %v1149_v28 }
 0x1b3   :  { %v226_v36 = vmax.f32 %v224_v23, %v1165_v35  ;;  %v583_v37 = vpop.permute.xlu0 %582  ;;  %v292_v23 = vmin.f32 %v290_v63, %v1165_v35  ;;  %v170_v63 = vsub.f32 %v964_v47, %v1183_v43 }
 0x1b4   :  { %v227_v24 = vmax.f32 %v225_v31, %v1167_v38  ;;  %v588_v44 = vsel %vm1005_vm4, %v583_v37, -inf  ;;  %v654_v45 = vsel %vm1005_vm4, %v583_v37, inf  ;;  %v585_v46 = vpop.permute.xlu1 %584 }
 0x1b5   :  { %v232_v55 = vrot.slane %v226_v36, 7  ;;  %v239_v56 = vrot.slane %v226_v36, 1  ;;  %v590_v39 = vmax.f32 %v580_v30, %v588_v44  ;;  %v656_v62 = vmin.f32 %v652_v25, %v654_v45 }
 0x1b6   :  { %v229_v59 = vrot.slane %v227_v24, 7  ;;  %v240_v60 = vrot.slane %v227_v24, 1  ;;  %v589_v3 = vsel %vm1005_vm4, %v585_v46, -inf  ;;  %v655_v5 = vsel %vm1005_vm4, %v585_v46, inf }
 0x1b7   :  { %v592_v2 = vmax.f32 %v590_v39, %v1144_v19  ;;  %v658_v17 = vmin.f32 %v656_v62, %v1144_v19  ;;  %v591_v20 = vmax.f32 %v581_v21, %v589_v3  ;;  %v657_v31 = vmin.f32 %v653_v9, %v655_v5 }
 0x1b8   :  { %v233_v4 = vsel %vm80_vm0, %v232_v55, %v229_v59  ;;  %v236_v6 = vsel %vm80_vm0, %v229_v59, %v232_v55  ;;  %v241_v7 = vsel %vm88_vm1, %v239_v56, %v240_v60  ;;  %v245_v8 = vsel %vm88_vm1, %v240_v60, %v239_v56 }
 0x1b9   :  { %v237_v10 = vsel %vm70_vm2, %v236_v6, -inf  ;;  %v247_v11 = vsel %vm73_vm3, %v245_v8, -inf  ;;  %v598_v27 = vrot.slane %v592_v2, 7  ;;  %v605_v30 = vrot.slane %v592_v2, 1 }
 0x1ba   :  { %v248_v14 = vmax.f32 %v237_v10, %v241_v7  ;;  %v249_v15 = vmax.f32 %v233_v4, %v247_v11  ;;  %v1273_v33 = vmin.f32 %v650_v32, %v658_v17  ;;  %v593_v57 = vmax.f32 %v591_v20, %v1146_v26 }
 0x1bb   :  { %v651_v44 = vmin.f32 %v649_v34, %v1146_v26  ;;  %v659_v45 = vmin.f32 %v657_v31, %v1146_v26  ;;  %v284_v21 = vmin.f32 %v282_v16, %v1165_v35  ;;  %v293_v32 = vmin.f32 %v291_v12, %v1167_v38 }
 0x1bc   :  { %v251_v25 = vmax.f32 %v249_v15, %v227_v24  ;;  %v250_v37 = vmax.f32 %v248_v14, %v226_v36  ;;  %v595_v54 = vrot.slane %v593_v57, 7  ;;  %v606_v55 = vrot.slane %v593_v57, 1  ;;  %664 = vrot.lane.b32.xlu0 %v1273_v33, %s909_s15 }
 0x1bd   :  { %v1285_v24 = vmin.f32 %v651_v44, %v659_v45  ;;  %v1289_v29 = vmin.f32 %v284_v21, %v292_v23  ;;  %v285_v36 = vmin.f32 %v283_v40, %v1167_v38  ;;  %v173_v3 = vmax.f32 %v171_v18, 0.0 }
 0x1be   :  { %v253_v46 = vsub.f32 %v1053_v53, %v251_v25  ;;  %v599_v34 = vsel %vm80_vm0, %v598_v27, %v595_v54  ;;  %v602_v16 = vsel %vm80_vm0, %v595_v54, %v598_v27  ;;  %v607_v53 = vsel %vm88_vm1, %v605_v30, %v606_v55 }
 0x1bf   :  { %v603_v56 = vsel %vm70_vm2, %v602_v16, -inf  ;;  %v611_v39 = vsel %vm88_vm1, %v606_v55, %v605_v30  ;;  %666 = vrot.lane.b32.xlu1 %v1285_v24, %s909_s15  ;;  %v1304_v61 = vmin.f32 %v285_v36, %v293_v32  ;;  %v537_v5 = vsub.f32 %v929_v0, %v1171_v41 }
 0x1c0   :  { %v255_v59 = vmax.f32 %v253_v46, 0.0  ;;  %v613_v28 = vsel %vm73_vm3, %v611_v39, -inf  ;;  %v614_v60 = vmax.f32 %v603_v56, %v607_v53  ;;  %298 = vrot.lane.b32.xlu0 %v1289_v29, %s909_s15  ;;  %v252_v6 = vsub.f32 %v1051_v52, %v250_v37 }
 0x1c1   :  { %v615_v62 = vmax.f32 %v599_v34, %v613_v28  ;;  %v536_v8 = vsub.f32 %v934_v1, %v1179_v42  ;;  %v172_v10 = vmax.f32 %v170_v63, 0.0  ;;  %v539_v14 = vmax.f32 %v537_v5, 0.0 }
 0x1c2   :  { %v257_v7 = vmul.f32 %v255_v59, %v173_v3  ;;  %v616_v9 = vmax.f32 %v614_v60, %v592_v2  ;;  %v254_v11 = vmax.f32 %v252_v6, 0.0  ;;  %v720_v40 = vrot.slane %v1285_v24, 7 }
 0x1c3   :  { %v617_v4 = vmax.f32 %v615_v62, %v593_v57  ;;  %300 = vrot.lane.b32.xlu1 %v1304_v61, %s909_s15  ;;  %v538_v17 = vmax.f32 %v536_v8, 0.0  ;;  %v722_v44 = vrot.slane %v1273_v33, 7  ;;  %v729_v45 = vrot.slane %v1273_v33, 1 }
 0x1c4   :  { %306 = vrot.lane.b32.xlu0 %v1289_v29, %s910_s0  ;;  %v259_v12 = vsub.f32 %v255_v59, %v257_v7  ;;  %v618_v0 = vsub.f32 %v1045_v50, %v616_v9  ;;  %v256_v52 = vmul.f32 %v254_v11, %v172_v10  ;;  %v730_v21 = vrot.slane %v1285_v24, 1 }
 0x1c5   :  { %v619_v43 = vsub.f32 %v1043_v48, %v617_v4  ;;  %v354_v46 = vrot.slane %v1304_v61, 7  ;;  %v356_v54 = vrot.slane %v1289_v29, 7  ;;  %v363_v55 = vrot.slane %v1289_v29, 1 }
 0x1c6   :  { %v261_v15 = vmax.f32 %v259_v12, 0.0  ;;  %v620_v1 = vmax.f32 %v618_v0, 0.0  ;;  %v258_v42 = vsub.f32 %v254_v11, %v256_v52  ;;  %v364_v32 = vrot.slane %v1304_v61, 1 }
 0x1c7   :  { %v621_v41 = vmax.f32 %v619_v43, 0.0  ;;  %308 = vrot.lane.b32.xlu1 %v1304_v61, %s910_s0  ;;  %v726_v34 = vsel %vm80_vm0, %v720_v40, %v722_v44  ;;  %v735_v16 = vsel %vm88_vm1, %v730_v21, %v729_v45  ;;  %v360_v36 = vsel %vm80_vm0, %v354_v46, %v356_v54 }
 0x1c8   :  { %672 = vrot.lane.b32.xlu0 %v1273_v33, %s910_s0  ;;  %v1323_v48 = vadd.f32 %v261_v15, %v173_v3  ;;  %v622_v20 = vmul.f32 %v620_v1, %v538_v17  ;;  %v260_v50 = vmax.f32 %v258_v42, 0.0  ;;  %v369_v56 = vsel %vm88_vm1, %v364_v32, %v363_v55 }
 0x1c9   :  { %v623_v2 = vmul.f32 %v621_v41, %v539_v14  ;;  %v727_v59 = vsel %vm70_vm2, %v726_v34, inf  ;;  %v731_v28 = vsel %vm88_vm1, %v729_v45, %v730_v21  ;;  %v723_v60 = vsel %vm80_vm0, %v722_v44, %v720_v40 }
 0x1ca   :  { %v624_v27 = vsub.f32 %v620_v1, %v622_v20  ;;  %v1327_v30 = vadd.f32 %v260_v50, %v172_v10  ;;  %v737_v62 = vsel %vm73_vm3, %v735_v16, inf  ;;  %v365_v63 = vsel %vm88_vm1, %v363_v55, %v364_v32 }
 0x1cb   :  { %674 = vrot.lane.b32.xlu1 %v1285_v24, %s910_s0  ;;  %v625_v23 = vsub.f32 %v621_v41, %v623_v2  ;;  %v1353_v3 = vsel %vm80_vm0, %v356_v54, %v354_v46  ;;  %v738_v4 = vmin.f32 %v727_v59, %v731_v28  ;;  %v739_v6 = vmin.f32 %v723_v60, %v737_v62 }
 0x1cc   :  { %v626_v25 = vmax.f32 %v624_v27, 0.0  ;;  %v361_v7 = vsel %vm70_vm2, %v360_v36, inf  ;;  %v1359_v8 = vsel %vm73_vm3, %v369_v56, inf }
 0x1cd   :  { %v627_v31 = vmax.f32 %v625_v23, 0.0  ;;  %v372_v52 = vmin.f32 %v361_v7, %v365_v63  ;;  %v740_v42 = vmin.f32 %v738_v4, %v1273_v33  ;;  %v741_v2 = vmin.f32 %v739_v6, %v1285_v24 }
 0x1ce   :  { %v1331_v37 = vadd.f32 %v626_v25, %v538_v17 }
 0x1cf   :  { %v1329_v57 = vadd.f32 %v627_v31, %v539_v14  ;;  %v373_v14 = vmin.f32 %v1353_v3, %v1359_v8 }
 0x22e   :  { %v665_v18 = vpop.permute.xlu0 %664 }
 0x22f   :  { %v670_v15 = vsel %vm1015_vm5, %v665_v18, -inf  ;;  %v742_v17 = vsel %vm1015_vm5, %v665_v18, inf }
 0x231   :  { %v667_v53 = vpop.permute.xlu1 %666 }
 0x232   :  { %v299_v39 = vpop.permute.xlu0 %298  ;;  %v671_v20 = vsel %vm1015_vm5, %v667_v53, -inf  ;;  %v743_v25 = vsel %vm1015_vm5, %v667_v53, inf }
 0x233   :  { %v304_v43 = vsel %vm1015_vm5, %v299_v39, -inf  ;;  %v376_v10 = vsel %vm1015_vm5, %v299_v39, inf }
 0x235   :  { %v301_v5 = vpop.permute.xlu1 %300 }
 0x236   :  { %v307_v9 = vpop.permute.xlu0 %306  ;;  %v305_v50 = vsel %vm1015_vm5, %v301_v5, -inf  ;;  %v377_v21 = vsel %vm1015_vm5, %v301_v5, inf }
 0x237   :  { %v312_v11 = vsel %vm1005_vm4, %v307_v9, -inf  ;;  %v378_v12 = vsel %vm1005_vm4, %v307_v9, inf }
 0x238   :  { %v314_v0 = vmax.f32 %v304_v43, %v312_v11  ;;  %v380_v41 = vmin.f32 %v376_v10, %v378_v12 }
 0x239   :  { %v309_v1 = vpop.permute.xlu1 %308 }
 0x23a   :  { %v316_v23 = vmax.f32 %v314_v0, %v1289_v29  ;;  %v313_v27 = vsel %vm1005_vm4, %v309_v1, -inf  ;;  %v673_v31 = vpop.permute.xlu0 %672  ;;  %v382_v46 = vmin.f32 %v380_v41, %v1289_v29  ;;  %v379_v16 = vsel %vm1005_vm4, %v309_v1, inf }
 0x23b   :  { %v315_v40 = vmax.f32 %v305_v50, %v313_v27  ;;  %v678_v44 = vsel %vm1005_vm4, %v673_v31, -inf  ;;  %v744_v45 = vsel %vm1005_vm4, %v673_v31, inf  ;;  %v381_v3 = vmin.f32 %v377_v21, %v379_v16 }
 0x23c   :  { %v680_v54 = vmax.f32 %v670_v15, %v678_v44  ;;  %v746_v55 = vmin.f32 %v742_v17, %v744_v45  ;;  %v322_v32 = vrot.slane %v316_v23, 7  ;;  %v329_v18 = vrot.slane %v316_v23, 1 }
 0x23d   :  { %v317_v34 = vmax.f32 %v315_v40, %v1304_v61  ;;  %v675_v53 = vpop.permute.xlu1 %674  ;;  %v374_v15 = vmin.f32 %v372_v52, %v1289_v29  ;;  %v383_v1 = vmin.f32 %v381_v3, %v1304_v61 }
 0x23e   :  { %v682_v36 = vmax.f32 %v680_v54, %v1273_v33  ;;  %v748_v56 = vmin.f32 %v746_v55, %v1273_v33  ;;  %v679_v39 = vsel %vm1005_vm4, %v675_v53, -inf  ;;  %v745_v59 = vsel %vm1005_vm4, %v675_v53, inf }
 0x23f   :  { %v319_v28 = vrot.slane %v317_v34, 7  ;;  %v330_v60 = vrot.slane %v317_v34, 1  ;;  %v681_v62 = vmax.f32 %v671_v20, %v679_v39  ;;  %v747_v63 = vmin.f32 %v743_v25, %v745_v59 }
 0x240   :  { %v688_v5 = vrot.slane %v682_v36, 7  ;;  %v695_v4 = vrot.slane %v682_v36, 1  ;;  %v1402_v6 = vmin.f32 %v740_v42, %v748_v56  ;;  %v384_v31 = vmin.f32 %v374_v15, %v382_v46 }
 0x241   :  { %v323_v7 = vsel %vm80_vm0, %v322_v32, %v319_v28  ;;  %v326_v8 = vsel %vm80_vm0, %v319_v28, %v322_v32  ;;  %v331_v9 = vsel %vm88_vm1, %v329_v18, %v330_v60  ;;  %v335_v43 = vsel %vm88_vm1, %v330_v60, %v329_v18 }
 0x242   :  { %v327_v10 = vsel %vm70_vm2, %v326_v8, -inf  ;;  %v337_v11 = vsel %vm73_vm3, %v335_v43, -inf  ;;  %v683_v12 = vmax.f32 %v681_v62, %v1285_v24  ;;  %v749_v0 = vmin.f32 %v747_v63, %v1285_v24  ;;  %754 = vrot.lane.b32.xlu0 %v1402_v6, %s909_s15 }
 0x243   :  { %v339_v41 = vmax.f32 %v323_v7, %v337_v11  ;;  %v338_v17 = vmax.f32 %v327_v10, %v331_v9  ;;  %v375_v25 = vmin.f32 %v373_v14, %v1304_v61 }
 0x244   :  { %v685_v42 = vrot.slane %v683_v12, 7  ;;  %v696_v20 = vrot.slane %v683_v12, 1  ;;  %v1418_v50 = vmin.f32 %v741_v2, %v749_v0 }
 0x245   :  { %v341_v27 = vmax.f32 %v339_v41, %v317_v34  ;;  %v340_v40 = vmax.f32 %v338_v17, %v316_v23  ;;  %v385_v32 = vmin.f32 %v375_v25, %v383_v1 }
 0x246   :  { %v689_v44 = vsel %vm80_vm0, %v688_v5, %v685_v42  ;;  %v692_v45 = vsel %vm80_vm0, %v685_v42, %v688_v5  ;;  %v697_v21 = vsel %vm88_vm1, %v695_v4, %v696_v20  ;;  %v701_v52 = vsel %vm88_vm1, %v696_v20, %v695_v4  ;;  %756 = vrot.lane.b32.xlu1 %v1418_v50, %s909_s15 }
 0x247   :  { %v693_v2 = vsel %vm70_vm2, %v692_v45, -inf  ;;  %v703_v46 = vsel %vm73_vm3, %v701_v52, -inf  ;;  %388 = vrot.lane.b32.xlu0 %v384_v31, %s909_s15  ;;  %v342_v14 = vsub.f32 %v1165_v35, %v340_v40  ;;  %v343_v23 = vsub.f32 %v1167_v38, %v341_v27 }
 0x248   :  { %v704_v54 = vmax.f32 %v693_v2, %v697_v21  ;;  %v705_v55 = vmax.f32 %v689_v44, %v703_v46 }
 0x249   :  { %v344_v18 = vmax.f32 %v342_v14, 0.0  ;;  %v345_v34 = vmax.f32 %v343_v23, 0.0 }
 0x24a   :  { %v707_v16 = vmax.f32 %v705_v55, %v683_v12  ;;  %390 = vrot.lane.b32.xlu1 %v385_v32, %s909_s15  ;;  %v706_v53 = vmax.f32 %v704_v54, %v682_v36 }
 0x24b   :  { %396 = vrot.lane.b32.xlu0 %v384_v31, %s910_s0  ;;  %v346_v56 = vmul.f32 %v344_v18, %v1327_v30  ;;  %v347_v39 = vmul.f32 %v345_v34, %v1323_v48 }
 0x24c   :  { %v709_v59 = vsub.f32 %v1146_v26, %v707_v16  ;;  %v708_v35 = vsub.f32 %v1144_v19, %v706_v53 }
 0x24d   :  { %v348_v38 = vsub.f32 %v344_v18, %v346_v56  ;;  %v349_v28 = vsub.f32 %v345_v34, %v347_v39 }
 0x24e   :  { %v711_v60 = vmax.f32 %v709_v59, 0.0  ;;  %398 = vrot.lane.b32.xlu1 %v385_v32, %s910_s0  ;;  %v710_v62 = vmax.f32 %v708_v35, 0.0 }
 0x24f   :  { %762 = vrot.lane.b32.xlu0 %v1402_v6, %s910_s0  ;;  %v350_v36 = vmax.f32 %v348_v38, 0.0  ;;  %v351_v63 = vmax.f32 %v349_v28, 0.0 }
 0x250   :  { %v712_v3 = vmul.f32 %v710_v62, %v1331_v37  ;;  %v713_v5 = vmul.f32 %v711_v60, %v1329_v57 }
 0x251   :  { %v1446_v4 = vadd.f32 %v350_v36, %v1327_v30  ;;  %v1449_v19 = vadd.f32 %v351_v63, %v1323_v48 }
 0x252   :  { %764 = vrot.lane.b32.xlu1 %v1418_v50, %s910_s0  ;;  %v714_v26 = vsub.f32 %v710_v62, %v712_v3  ;;  %v715_v7 = vsub.f32 %v711_v60, %v713_v5 }
 0x254   :  { %v716_v8 = vmax.f32 %v714_v26, 0.0  ;;  %v717_v9 = vmax.f32 %v715_v7, 0.0 }
 0x256   :  { %v1454_v43 = vadd.f32 %v716_v8, %v1331_v37  ;;  %v1457_v10 = vadd.f32 %v717_v9, %v1329_v57 }
 0x2b4   :  { %v755_v11 = vpop.permute.xlu0 %754 }
 0x2b5   :  { %v760_v27 = vsel %vm1015_vm5, %v755_v11, -inf }
 0x2b8   :  { %v757_v12 = vpop.permute.xlu1 %756 }
 0x2b9   :  { %v389_v30 = vpop.permute.xlu0 %388  ;;  %v761_v46 = vsel %vm1015_vm5, %v757_v12, -inf }
 0x2ba   :  { %v394_v48 = vsel %vm1015_vm5, %v389_v30, -inf }
 0x2bc   :  { %v391_v0 = vpop.permute.xlu1 %390 }
 0x2bd   :  { %v397_v41 = vpop.permute.xlu0 %396  ;;  %v395_v37 = vsel %vm1015_vm5, %v391_v0, -inf }
 0x2be   :  { %v402_v15 = vsel %vm1005_vm4, %v397_v41, -inf }
 0x2bf   :  { %v404_v17 = vmax.f32 %v394_v48, %v402_v15 }
 0x2c0   :  { %v399_v1 = vpop.permute.xlu1 %398 }
 0x2c1   :  { %v406_v42 = vmax.f32 %v404_v17, %v384_v31  ;;  %v403_v57 = vsel %vm1005_vm4, %v399_v1, -inf  ;;  %v763_v20 = vpop.permute.xlu0 %762 }
 0x2c2   :  { %v405_v25 = vmax.f32 %v395_v37, %v403_v57  ;;  %v768_v40 = vsel %vm1005_vm4, %v763_v20, -inf }
 0x2c3   :  { %v770_v44 = vmax.f32 %v760_v27, %v768_v40  ;;  %v412_v45 = vrot.slane %v406_v42, 7  ;;  %v419_v21 = vrot.slane %v406_v42, 1 }
 0x2c4   :  { %v407_v52 = vmax.f32 %v405_v25, %v385_v32  ;;  %v765_v2 = vpop.permute.xlu1 %764 }
 0x2c5   :  { %v772_v31 = vmax.f32 %v770_v44, %v1402_v6  ;;  %v769_v14 = vsel %vm1005_vm4, %v765_v2, -inf }
 0x2c6   :  { %v409_v23 = vrot.slane %v407_v52, 7  ;;  %v420_v54 = vrot.slane %v407_v52, 1  ;;  %v771_v55 = vmax.f32 %v761_v46, %v769_v14 }
 0x2c7   :  { %v778_v18 = vrot.slane %v772_v31, 7  ;;  %v785_v56 = vrot.slane %v772_v31, 1 }
 0x2c8   :  { %v413_v34 = vsel %vm80_vm0, %v412_v45, %v409_v23  ;;  %v416_v16 = vsel %vm80_vm0, %v409_v23, %v412_v45  ;;  %v421_v53 = vsel %vm88_vm1, %v419_v21, %v420_v54  ;;  %v425_v32 = vsel %vm88_vm1, %v420_v54, %v419_v21  ;;  %v908_v21 = vld [vmem:[%s1520_s1 + $0x8] sm:$0xff] }
 0x2c9   :  { %v427_v22 = vsel %vm73_vm3, %v425_v32, -inf  ;;  %v773_v6 = vmax.f32 %v771_v55, %v1418_v50  ;;  %v417_v13 = vsel %vm70_vm2, %v416_v16, -inf }
 0x2ca   :  { %v429_v39 = vmax.f32 %v413_v34, %v427_v22  ;;  %v428_v59 = vmax.f32 %v417_v13, %v421_v53 }
 0x2cb   :  { %v775_v35 = vrot.slane %v773_v6, 7  ;;  %v786_v38 = vrot.slane %v773_v6, 1 }
 0x2cc   :  { %v431_v28 = vmax.f32 %v429_v39, %v407_v52  ;;  %v430_v60 = vmax.f32 %v428_v59, %v406_v42 }
 0x2cd   :  { %v779_v62 = vsel %vm80_vm0, %v778_v18, %v775_v35  ;;  %v782_v36 = vsel %vm80_vm0, %v775_v35, %v778_v18  ;;  %v787_v63 = vsel %vm88_vm1, %v785_v56, %v786_v38  ;;  %v791_v3 = vsel %vm88_vm1, %v786_v38, %v785_v56 }
 0x2ce   :  { %v783_v50 = vsel %vm70_vm2, %v782_v36, -inf  ;;  %v793_v5 = vsel %vm73_vm3, %v791_v3, -inf  ;;  %v432_v26 = vsub.f32 %v1289_v29, %v430_v60  ;;  %v433_v7 = vsub.f32 %v1304_v61, %v431_v28 }
 0x2cf   :  { %v794_v8 = vmax.f32 %v783_v50, %v787_v63  ;;  %v795_v9 = vmax.f32 %v779_v62, %v793_v5 }
 0x2d0   :  { %v434_v11 = vmax.f32 %v432_v26, 0.0  ;;  %v435_v12 = vmax.f32 %v433_v7, 0.0 }
 0x2d1   :  { %v797_v30 = vmax.f32 %v795_v9, %v773_v6  ;;  %v796_v0 = vmax.f32 %v794_v8, %v772_v31 }
 0x2d2   :  { %v436_v41 = vmul.f32 %v434_v11, %v1446_v4  ;;  %v437_v48 = vmul.f32 %v435_v12, %v1449_v19 }
 0x2d3   :  { %v799_v15 = vsub.f32 %v1285_v24, %v797_v30  ;;  %v798_v17 = vsub.f32 %v1273_v33, %v796_v0  ;;  %v907_v33 = vld [vmem:[%s1520_s1] sm:$0xff] }
 0x2d4   :  { %v438_v58 = vsub.f32 %v434_v11, %v436_v41  ;;  %v439_v1 = vsub.f32 %v435_v12, %v437_v48 }
 0x2d5   :  { %v800_v37 = vmax.f32 %v798_v17, 0.0  ;;  %v801_v29 = vmax.f32 %v799_v15, 0.0 }
 0x2d6   :  { %v440_v42 = vmax.f32 %v438_v58, 0.0  ;;  %v441_v61 = vmax.f32 %v439_v1, 0.0 }
 0x2d7   :  { %v802_v57 = vmul.f32 %v800_v37, %v1454_v43  ;;  %v803_v20 = vmul.f32 %v801_v29, %v1457_v10 }
 0x2d8   :  { %v442_v27 = vadd.f32 %v440_v42, %v1446_v4  ;;  %v443_v25 = vadd.f32 %v441_v61, %v1449_v19 }
 0x2d9   :  { %v804_v40 = vsub.f32 %v800_v37, %v802_v57  ;;  %v805_v44 = vsub.f32 %v801_v29, %v803_v20 }
 0x2da   :  { %v822_v45 = vadd.f32 %v443_v25, %v442_v27  ;;  %v810_v24 = vmul.f32 %v907_v33, %v442_v27  ;;  %v811_v52 = vmul.f32 %v908_v21, %v443_v25 }
 0x2db   :  { %v806_v2 = vmax.f32 %v804_v40, 0.0  ;;  %v807_v46 = vmax.f32 %v805_v44, 0.0 }
 0x2dc   :  { %823 = vadd.xlane.f32.xlu1 %v822_v45  ;;  %v812_v31 = vadd.f32 %v811_v52, %v810_v24 }
 0x2dd   :  { %v808_v4 = vadd.f32 %v806_v2, %v1454_v43  ;;  %v809_v19 = vadd.f32 %v807_v46, %v1457_v10 }
 0x2df   :  { %v832_v14 = vmul.f32 %v808_v4, %v964_v47  ;;  %v833_v23 = vmul.f32 %v809_v19, %v970_v49  ;;  %v844_v54 = vadd.f32 %v809_v19, %v808_v4 }
 0x2e1   :  { %v834_v55 = vadd.f32 %v833_v23, %v832_v14 }
 0x2e3   :  { %835 = vadd.xlane.f32.xlu0 %v834_v55 }
 0x2e7   :  { %813 = vadd.xlane.f32.xlu0 %v812_v31 }
 0x2eb   :  { %845 = vadd.xlane.f32.xlu0 %v844_v54 }
 0x369   :  { %v824_v18 = vpop.xlane.xlu1 %823 }
 0x36a   :  { %v825_v34 = vrot.slane %v824_v18, 4 }
 0x36c   :  { %v826_v16 = vadd.f32 %v825_v34, %v824_v18 }
 0x36e   :  { %v827_v56 = vrot.slane %v826_v16, 2 }
 0x370   :  { %v836_v53 = vpop.xlane.xlu0 %835  ;;  %v828_v39 = vadd.f32 %v827_v56, %v826_v16 }
 0x371   :  { %v837_v32 = vrot.slane %v836_v53, 4 }
 0x372   :  { %v829_v60 = vrot.slane %v828_v39, 1 }
 0x373   :  { %v838_v22 = vadd.f32 %v837_v32, %v836_v53 }
 0x374   :  { %v814_v6 = vpop.xlane.xlu0 %813  ;;  %v830_v5 = vadd.f32 %v829_v60, %v828_v39 }
 0x375   :  { %v839_v43 = vrot.slane %v838_v22, 2  ;;  %v815_v13 = vrot.slane %v814_v6, 4 }
 0x377   :  { %v816_v10 = vadd.f32 %v815_v13, %v814_v6  ;;  %v840_v35 = vadd.f32 %v839_v43, %v838_v22 }
 0x378   :  { %v846_v47 = vpop.xlane.xlu0 %845 }
 0x379   :  { %v817_v59 = vrot.slane %v816_v10, 2  ;;  %v847_v49 = vrot.slane %v846_v47, 4  ;;  %v841_v63 = vrot.slane %v840_v35, 1 }
 0x37b   :  { %v848_v38 = vadd.f32 %v847_v49, %v846_v47  ;;  %v818_v28 = vadd.f32 %v817_v59, %v816_v10  ;;  %v842_v26 = vadd.f32 %v841_v63, %v840_v35 }
 0x37d   :  { %v849_v62 = vrot.slane %v848_v38, 2  ;;  %v819_v36 = vrot.slane %v818_v28, 1 }
 0x37f   :  { %v850_v3 = vadd.f32 %v849_v62, %v848_v38  ;;  %v820_v50 = vadd.f32 %v819_v36, %v818_v28 }
 0x381   :  { %877 = vpush %v820_v50  ;;  %v851_v7 = vrot.slane %v850_v3, 1 }
 0x382   :  { %879 = vpush %v830_v5 }
 0x383   :  { %881 = vpush %v842_v26  ;;  %v852_v8 = vadd.f32 %v851_v7, %v850_v3 }
 0x385   :  { %883 = vpush %v852_v8 }
 0x3b2   :  { %s878_s1 = spop %877 }
 0x3b3   :  { %s880_s6 = spop %879  ;;  %v864_v41 = vstv %s878_s1 }
 0x3b4   :  { %s882_s7 = spop %881  ;;  %v862_v30 = vstv %s880_s6 }
 0x3b5   :  { %v860_v11 = vstv %s882_s7 }
 0x3b6   :  { %s884_s8 = spop %883 }
 0x3b7   :  { %v858_v9 = vstv %s884_s8 }
 0x3b8   :  { %v859_v12 = vsel %vm857_vm6, %v858_v9, 0.0 }
 0x3b9   :  { %v861_v0 = vsel %vm856_vm7, %v860_v11, %v859_v12 }
 0x3ba   :  { %v863_v48 = vsel %vm855_vm8, %v862_v30, %v861_v0 }
 0x3bb   :  { %v865_v15 = vsel %vm854_vm9, %v864_v41, %v863_v48 }
 0x3bc   :  { %866 = vst [vmem:[%s1522_s2] sm:$0xff] %v865_v15 }

</bundles_post_ra>
